<compile_context>
chip_gen: v7x
topology: tpu7x:2x2x1
jax: 0.10.0
libtpu: 0.0.40
codegen_flags: <defaults>
</compile_context>

<pallas_src>
import jax
import jax.numpy as jnp
from jax.experimental import pallas as pl
from jax.experimental.pallas import tpu as pltpu


TAG_PAD = 128    # tag dim padded to one full vreg lane span (lane-dense output)


# ----------------------------------------------------------------------------
# Kernel: token gather from the folded (emb @ Wih^T + b) table, fused LSTM
# recurrence (unrolled over T), per-step hidden2tag + log_softmax.
#   tok_ref : (B, T)      int32 SMEM (scalar prefetch) token ids
#   xw_ref  : (V, 4H)     f32   folded embedding+input-projection+bias table
#   whh_ref : (H, 4H)     bf16  recurrent weights, gates packed [i|f|g|o]
#   wout_ref: (H, TSp)    bf16  hidden2tag weights (padded cols are 0)
#   bout_ref: (1, TSp)    f32   hidden2tag bias; padded cols are -1e30
#   out_ref : (Bp, T, TSp) f32  log-probs, batch-major (padding sliced off)
#   xg_scr  : (T, Bp, 4H) f32   gathered per-token gate inputs (VMEM scratch)
# ----------------------------------------------------------------------------
def lstm_tagger_kernel(tok_ref, xw_ref, whh_ref, wout_ref, bout_ref,
                       out_ref, xg_scr):
    B, T = tok_ref.shape
    H = whh_ref.shape[0]
    Bp = out_ref.shape[0]

    # Fused embedding gather + input projection: one row gather per token.
    xg_scr[...] = jnp.zeros(xg_scr.shape, xg_scr.dtype)      # padded batch -> 0
    for t in range(T):
        for b in range(B):
            tok = tok_ref[b, t]
            xg_scr[t, pl.ds(b, 1), :] = xw_ref[pl.ds(tok, 1), :]

    whh = whh_ref[...]      # load once, reused every step
    wout = wout_ref[...]
    bout = bout_ref[...]

    h = jnp.zeros((Bp, H), jnp.float32)
    c = jnp.zeros((Bp, H), jnp.float32)
    hb = h.astype(jnp.bfloat16)                              # MXU LHS copy

    # Time recurrence, fully unrolled (T small & static). Only h @ Whh is on
    # the serial critical path; the per-step projection/softmax overlaps.
    for t in range(T):
        ga = xg_scr[t] + jnp.dot(hb, whh, preferred_element_type=jnp.float32)
        sg = jax.nn.sigmoid(ga)          # one EUP pass over all 4 packed gates
        th = jnp.tanh(ga)                # one EUP pass over all 4 packed gates
        i_g = sg[:, 0 * H:1 * H]
        f_g = sg[:, 1 * H:2 * H]
        g_g = th[:, 2 * H:3 * H]
        o_g = sg[:, 3 * H:4 * H]
        c = f_g * c + i_g * g_g
        h = o_g * jnp.tanh(c)
        hb = h.astype(jnp.bfloat16)

        # hidden2tag + log_softmax for this step, stored batch-major.
        tag = jnp.dot(hb, wout, preferred_element_type=jnp.float32) + bout
        m = jnp.max(tag, axis=-1, keepdims=True)
        lse = jnp.log(jnp.sum(jnp.exp(tag - m), axis=-1, keepdims=True)) + m
        out_ref[:, t, :] = tag - lse


# ----------------------------------------------------------------------------
# One-time weight packing (NOT on the per-call path).
# ----------------------------------------------------------------------------
def prepare_params(params, tag_pad=TAG_PAD):
    w_ih, w_hh = params["w_ih"], params["w_hh"]          # (4H, E), (4H, H)
    H = w_hh.shape[1]
    TS = params["w_out"].shape[0]
    assert TS <= tag_pad, "tagset_size must fit in the padded tag lane span"

    b = params["b_ih"] + params["b_hh"]                   # (4H,)
    # Fold embedding + input projection + gate bias into one lookup table.
    # Exact for eval-mode forward (dropout = identity, projection is linear).
    xw_table = (params["embedding"].astype(jnp.float32) @ w_ih.T + b)  # (V, 4H)
    whh = w_hh.T.astype(jnp.bfloat16)                     # (H, 4H) [i|f|g|o]
    wout = (jnp.zeros((H, tag_pad), jnp.float32)
            .at[:, :TS].set(params["w_out"].T).astype(jnp.bfloat16))
    bout = jnp.full((1, tag_pad), -1e30, jnp.float32).at[0, :TS].set(
        params["b_out"])
    return {"xw_table": xw_table.astype(jnp.float32),
            "whh": whh, "wout": wout, "bout": bout}


def lstm_tagger_forward(tokens, packed, *, tagset_size):
    """tokens: (B, T) int32 -> log-probs (B, T, tagset_size) float32 (eval)."""
    # TODO(synk): nn.Dropout is identity in eval mode; training-mode Bernoulli
    # masking is not implemented here.
    xw, whh = packed["xw_table"], packed["whh"]
    wout, bout = packed["wout"], packed["bout"]
    B, T = tokens.shape
    H, G = whh.shape                                      # G = 4H
    TSp = wout.shape[1]
    Bp = max(8, -(-B // 8) * 8)                           # sublane-pad batch

    out = pl.pallas_call(
        lstm_tagger_kernel,
        out_shape=jax.ShapeDtypeStruct((Bp, T, TSp), jnp.float32),
        grid_spec=pltpu.PrefetchScalarGridSpec(
            num_scalar_prefetch=1,                        # tokens -> SMEM
            grid=(1,),                                    # single invocation
            in_specs=[
                pl.BlockSpec(xw.shape, lambda i, tok: (0, 0)),
                pl.BlockSpec((H, G), lambda i, tok: (0, 0)),
                pl.BlockSpec((H, TSp), lambda i, tok: (0, 0)),
                pl.BlockSpec((1, TSp), lambda i, tok: (0, 0)),
            ],
            out_specs=pl.BlockSpec((Bp, T, TSp), lambda i, tok: (0, 0, 0)),
            scratch_shapes=[pltpu.VMEM((T, Bp, G), jnp.float32)],
        ),
        compiler_params=pltpu.CompilerParams(
            dimension_semantics=("arbitrary",)),          # sequential recurrence
    )(tokens, xw, whh, wout, bout)

    # Drop batch / tag padding (the only per-call op besides the pallas_call).
    return out[:B, :, :tagset_size]


# ----------------------------------------------------------------------------
# Pure-JAX f32 reference (lax.scan LSTM) for correctness check.
# ----------------------------------------------------------------------------
def reference_forward(tokens, params):
    emb = jnp.take(params["embedding"], tokens, axis=0)      # (B, T, E)
    H = params["w_hh"].shape[1]

    def cell(carry, x_t):
        h, c = carry
        gates = (x_t @ params["w_ih"].T + h @ params["w_hh"].T
                 + params["b_ih"] + params["b_hh"])
        i_g = jax.nn.sigmoid(gates[:, 0 * H:1 * H])
        f_g = jax.nn.sigmoid(gates[:, 1 * H:2 * H])
        g_g = jnp.tanh(gates[:, 2 * H:3 * H])
        o_g = jax.nn.sigmoid(gates[:, 3 * H:4 * H])
        c_new = f_g * c + i_g * g_g
        h_new = o_g * jnp.tanh(c_new)
        return (h_new, c_new), h_new

    B = tokens.shape[0]
    init = (jnp.zeros((B, H), jnp.float32), jnp.zeros((B, H), jnp.float32))
    _, hs = jax.lax.scan(cell, init, jnp.transpose(emb, (1, 0, 2)))
    hs = jnp.transpose(hs, (1, 0, 2))                        # (B, T, H)
    tag = hs @ params["w_out"].T + params["b_out"]
    return jax.nn.log_softmax(tag, axis=2)


def init_params(key, vocab_size, tagset_size, embedding_dim, hidden_dim):
    ks = jax.random.split(key, 8)
    k_lstm = 1.0 / jnp.sqrt(hidden_dim)
    emb = jax.random.normal(ks[0], (vocab_size, embedding_dim), jnp.float32)
    emb = emb.at[0].set(0.0)  # padding_idx=0
    u = lambda k, shp, s: jax.random.uniform(k, shp, jnp.float32, -s, s)
    return {
        "embedding": emb,
        "w_ih": u(ks[1], (4 * hidden_dim, embedding_dim), k_lstm),
        "w_hh": u(ks[2], (4 * hidden_dim, hidden_dim), k_lstm),
        "b_ih": u(ks[3], (4 * hidden_dim,), k_lstm),
        "b_hh": u(ks[4], (4 * hidden_dim,), k_lstm),
        "w_out": u(ks[5], (tagset_size, hidden_dim), k_lstm),
        "b_out": u(ks[6], (tagset_size,), k_lstm),
    }


if __name__ == "__main__":
    VOCAB, TAGSET, EMB, HID = 50, 10, 32, 32
    B, T = 2, 8

    key = jax.random.PRNGKey(0)
    kp, kt = jax.random.split(key)
    params = init_params(kp, VOCAB, TAGSET, EMB, HID)
    tokens = jax.random.randint(kt, (B, T), 0, VOCAB, dtype=jnp.int32)

    packed = prepare_params(params)            # one-time packing, off hot path

    fwd = jax.jit(lstm_tagger_forward, static_argnames=("tagset_size",))
    out = jax.block_until_ready(fwd(tokens, packed, tagset_size=TAGSET))
    ref = jax.block_until_ready(reference_forward(tokens, params))

    assert out.shape == (B, T, TAGSET), out.shape
    # bf16 MXU operands (f32 accumulation / state / softmax) => looser
    # tolerance vs the pure-f32 scan reference.
    err = float(jnp.max(jnp.abs(out - ref)))
    assert err < 3e-2, err
    print("KERNEL_OK")
</pallas_src>

<mosaic_0001>
module attributes {stable_mosaic.version = 11 : i64} {
  func.func @lstm_tagger_kernel(%arg0: i32, %arg1: memref<2x8xi32, #tpu.memory_space<smem>>, %arg2: memref<50x128xf32, #tpu.memory_space<vmem>>, %arg3: memref<32x128xbf16, #tpu.memory_space<vmem>>, %arg4: memref<32x128xbf16, #tpu.memory_space<vmem>>, %arg5: memref<1x128xf32, #tpu.memory_space<vmem>>, %arg6: memref<8x8x128xf32, #tpu.memory_space<vmem>>, %arg7: memref<8x8x128xf32, #tpu.memory_space<vmem>>) attributes {dimension_semantics = [#tpu.dimension_semantics<arbitrary>], iteration_bounds = array<i64: 1>, scalar_prefetch = 1 : i64, scratch_operands = 1 : i64, tpu.core_type = #tpu.core_type<tc>, window_params = [{pipeline_mode = #tpu.pipeline_mode<synchronous>, transform_indices = @transform_0, window_bounds = array<i64: 50, 128>}, {pipeline_mode = #tpu.pipeline_mode<synchronous>, transform_indices = @transform_1, window_bounds = array<i64: 32, 128>}, {pipeline_mode = #tpu.pipeline_mode<synchronous>, transform_indices = @transform_2, window_bounds = array<i64: 32, 128>}, {pipeline_mode = #tpu.pipeline_mode<synchronous>, transform_indices = @transform_3, window_bounds = array<i64: 1, 128>}, {pipeline_mode = #tpu.pipeline_mode<synchronous>, transform_indices = @transform_4, window_bounds = array<i64: 8, 8, 128>}]} {
    %cst = arith.constant 0.000000e+00 : f32
    %0 = vector.broadcast %cst : f32 to vector<8x8x128xf32>
    %c0 = arith.constant 0 : index
    %c0_0 = arith.constant 0 : index
    %c0_1 = arith.constant 0 : index
    %1 = vector.load %arg7[%c0, %c0_0, %c0_1] : memref<8x8x128xf32, #tpu.memory_space<vmem>>, vector<8x8x128xf32>
    tpu.vector_store %arg7[%c0, %c0_0, %c0_1], %0 {strides = array<i32>} : memref<8x8x128xf32, #tpu.memory_space<vmem>>, vector<8x8x128xf32>,
    %c0_2 = arith.constant 0 : index
    %c0_3 = arith.constant 0 : index
    %2 = memref.load %arg1[%c0_2, %c0_3] : memref<2x8xi32, #tpu.memory_space<smem>>
    %3 = arith.index_cast %2 : i32 to index
    %c0_4 = arith.constant 0 : index
    %4 = vector.load %arg2[%3, %c0_4] : memref<50x128xf32, #tpu.memory_space<vmem>>, vector<1x128xf32>
    %c0_5 = arith.constant 0 : index
    %c0_6 = arith.constant 0 : index
    %c0_7 = arith.constant 0 : index
    %5 = vector.load %arg7[%c0_5, %c0_6, %c0_7] : memref<8x8x128xf32, #tpu.memory_space<vmem>>, vector<1x1x128xf32>
    %6 = vector.shape_cast %5 : vector<1x1x128xf32> to vector<1x128xf32>
    %7 = vector.shape_cast %4 : vector<1x128xf32> to vector<1x1x128xf32>
    tpu.vector_store %arg7[%c0_5, %c0_6, %c0_7], %7 {strides = array<i32>} : memref<8x8x128xf32, #tpu.memory_space<vmem>>, vector<1x1x128xf32>,
    %c1 = arith.constant 1 : index
    %c0_8 = arith.constant 0 : index
    %8 = memref.load %arg1[%c1, %c0_8] : memref<2x8xi32, #tpu.memory_space<smem>>
    %9 = arith.index_cast %8 : i32 to index
    %c0_9 = arith.constant 0 : index
    %10 = vector.load %arg2[%9, %c0_9] : memref<50x128xf32, #tpu.memory_space<vmem>>, vector<1x128xf32>
    %c0_10 = arith.constant 0 : index
    %c1_11 = arith.constant 1 : index
    %c0_12 = arith.constant 0 : index
    %11 = vector.load %arg7[%c0_10, %c1_11, %c0_12] : memref<8x8x128xf32, #tpu.memory_space<vmem>>, vector<1x1x128xf32>
    %12 = vector.shape_cast %11 : vector<1x1x128xf32> to vector<1x128xf32>
    %13 = vector.shape_cast %10 : vector<1x128xf32> to vector<1x1x128xf32>
    tpu.vector_store %arg7[%c0_10, %c1_11, %c0_12], %13 {strides = array<i32>} : memref<8x8x128xf32, #tpu.memory_space<vmem>>, vector<1x1x128xf32>,
    %c0_13 = arith.constant 0 : index
    %c1_14 = arith.constant 1 : index
    %14 = memref.load %arg1[%c0_13, %c1_14] : memref<2x8xi32, #tpu.memory_space<smem>>
    %15 = arith.index_cast %14 : i32 to index
    %c0_15 = arith.constant 0 : index
    %16 = vector.load %arg2[%15, %c0_15] : memref<50x128xf32, #tpu.memory_space<vmem>>, vector<1x128xf32>
    %c1_16 = arith.constant 1 : index
    %c0_17 = arith.constant 0 : index
    %c0_18 = arith.constant 0 : index
    %17 = vector.load %arg7[%c1_16, %c0_17, %c0_18] : memref<8x8x128xf32, #tpu.memory_space<vmem>>, vector<1x1x128xf32>
    %18 = vector.shape_cast %17 : vector<1x1x128xf32> to vector<1x128xf32>
    %19 = vector.shape_cast %16 : vector<1x128xf32> to vector<1x1x128xf32>
    tpu.vector_store %arg7[%c1_16, %c0_17, %c0_18], %19 {strides = array<i32>} : memref<8x8x128xf32, #tpu.memory_space<vmem>>, vector<1x1x128xf32>,
    %c1_19 = arith.constant 1 : index
    %c1_20 = arith.constant 1 : index
    %20 = memref.load %arg1[%c1_19, %c1_20] : memref<2x8xi32, #tpu.memory_space<smem>>
    %21 = arith.index_cast %20 : i32 to index
    %c0_21 = arith.constant 0 : index
    %22 = vector.load %arg2[%21, %c0_21] : memref<50x128xf32, #tpu.memory_space<vmem>>, vector<1x128xf32>
    %c1_22 = arith.constant 1 : index
    %c1_23 = arith.constant 1 : index
    %c0_24 = arith.constant 0 : index
    %23 = vector.load %arg7[%c1_22, %c1_23, %c0_24] : memref<8x8x128xf32, #tpu.memory_space<vmem>>, vector<1x1x128xf32>
    %24 = vector.shape_cast %23 : vector<1x1x128xf32> to vector<1x128xf32>
    %25 = vector.shape_cast %22 : vector<1x128xf32> to vector<1x1x128xf32>
    tpu.vector_store %arg7[%c1_22, %c1_23, %c0_24], %25 {strides = array<i32>} : memref<8x8x128xf32, #tpu.memory_space<vmem>>, vector<1x1x128xf32>,
    %c0_25 = arith.constant 0 : index
    %c2 = arith.constant 2 : index
    %26 = memref.load %arg1[%c0_25, %c2] : memref<2x8xi32, #tpu.memory_space<smem>>
    %27 = arith.index_cast %26 : i32 to index
    %c0_26 = arith.constant 0 : index
    %28 = vector.load %arg2[%27, %c0_26] : memref<50x128xf32, #tpu.memory_space<vmem>>, vector<1x128xf32>
    %c2_27 = arith.constant 2 : index
    %c0_28 = arith.constant 0 : index
    %c0_29 = arith.constant 0 : index
    %29 = vector.load %arg7[%c2_27, %c0_28, %c0_29] : memref<8x8x128xf32, #tpu.memory_space<vmem>>, vector<1x1x128xf32>
    %30 = vector.shape_cast %29 : vector<1x1x128xf32> to vector<1x128xf32>
    %31 = vector.shape_cast %28 : vector<1x128xf32> to vector<1x1x128xf32>
    tpu.vector_store %arg7[%c2_27, %c0_28, %c0_29], %31 {strides = array<i32>} : memref<8x8x128xf32, #tpu.memory_space<vmem>>, vector<1x1x128xf32>,
    %c1_30 = arith.constant 1 : index
    %c2_31 = arith.constant 2 : index
    %32 = memref.load %arg1[%c1_30, %c2_31] : memref<2x8xi32, #tpu.memory_space<smem>>
    %33 = arith.index_cast %32 : i32 to index
    %c0_32 = arith.constant 0 : index
    %34 = vector.load %arg2[%33, %c0_32] : memref<50x128xf32, #tpu.memory_space<vmem>>, vector<1x128xf32>
    %c2_33 = arith.constant 2 : index
    %c1_34 = arith.constant 1 : index
    %c0_35 = arith.constant 0 : index
    %35 = vector.load %arg7[%c2_33, %c1_34, %c0_35] : memref<8x8x128xf32, #tpu.memory_space<vmem>>, vector<1x1x128xf32>
    %36 = vector.shape_cast %35 : vector<1x1x128xf32> to vector<1x128xf32>
    %37 = vector.shape_cast %34 : vector<1x128xf32> to vector<1x1x128xf32>
    tpu.vector_store %arg7[%c2_33, %c1_34, %c0_35], %37 {strides = array<i32>} : memref<8x8x128xf32, #tpu.memory_space<vmem>>, vector<1x1x128xf32>,
    %c0_36 = arith.constant 0 : index
    %c3 = arith.constant 3 : index
    %38 = memref.load %arg1[%c0_36, %c3] : memref<2x8xi32, #tpu.memory_space<smem>>
    %39 = arith.index_cast %38 : i32 to index
    %c0_37 = arith.constant 0 : index
    %40 = vector.load %arg2[%39, %c0_37] : memref<50x128xf32, #tpu.memory_space<vmem>>, vector<1x128xf32>
    %c3_38 = arith.constant 3 : index
    %c0_39 = arith.constant 0 : index
    %c0_40 = arith.constant 0 : index
    %41 = vector.load %arg7[%c3_38, %c0_39, %c0_40] : memref<8x8x128xf32, #tpu.memory_space<vmem>>, vector<1x1x128xf32>
    %42 = vector.shape_cast %41 : vector<1x1x128xf32> to vector<1x128xf32>
    %43 = vector.shape_cast %40 : vector<1x128xf32> to vector<1x1x128xf32>
    tpu.vector_store %arg7[%c3_38, %c0_39, %c0_40], %43 {strides = array<i32>} : memref<8x8x128xf32, #tpu.memory_space<vmem>>, vector<1x1x128xf32>,
    %c1_41 = arith.constant 1 : index
    %c3_42 = arith.constant 3 : index
    %44 = memref.load %arg1[%c1_41, %c3_42] : memref<2x8xi32, #tpu.memory_space<smem>>
    %45 = arith.index_cast %44 : i32 to index
    %c0_43 = arith.constant 0 : index
    %46 = vector.load %arg2[%45, %c0_43] : memref<50x128xf32, #tpu.memory_space<vmem>>, vector<1x128xf32>
    %c3_44 = arith.constant 3 : index
    %c1_45 = arith.constant 1 : index
    %c0_46 = arith.constant 0 : index
    %47 = vector.load %arg7[%c3_44, %c1_45, %c0_46] : memref<8x8x128xf32, #tpu.memory_space<vmem>>, vector<1x1x128xf32>
    %48 = vector.shape_cast %47 : vector<1x1x128xf32> to vector<1x128xf32>
    %49 = vector.shape_cast %46 : vector<1x128xf32> to vector<1x1x128xf32>
    tpu.vector_store %arg7[%c3_44, %c1_45, %c0_46], %49 {strides = array<i32>} : memref<8x8x128xf32, #tpu.memory_space<vmem>>, vector<1x1x128xf32>,
    %c0_47 = arith.constant 0 : index
    %c4 = arith.constant 4 : index
    %50 = memref.load %arg1[%c0_47, %c4] : memref<2x8xi32, #tpu.memory_space<smem>>
    %51 = arith.index_cast %50 : i32 to index
    %c0_48 = arith.constant 0 : index
    %52 = vector.load %arg2[%51, %c0_48] : memref<50x128xf32, #tpu.memory_space<vmem>>, vector<1x128xf32>
    %c4_49 = arith.constant 4 : index
    %c0_50 = arith.constant 0 : index
    %c0_51 = arith.constant 0 : index
    %53 = vector.load %arg7[%c4_49, %c0_50, %c0_51] : memref<8x8x128xf32, #tpu.memory_space<vmem>>, vector<1x1x128xf32>
    %54 = vector.shape_cast %53 : vector<1x1x128xf32> to vector<1x128xf32>
    %55 = vector.shape_cast %52 : vector<1x128xf32> to vector<1x1x128xf32>
    tpu.vector_store %arg7[%c4_49, %c0_50, %c0_51], %55 {strides = array<i32>} : memref<8x8x128xf32, #tpu.memory_space<vmem>>, vector<1x1x128xf32>,
    %c1_52 = arith.constant 1 : index
    %c4_53 = arith.constant 4 : index
    %56 = memref.load %arg1[%c1_52, %c4_53] : memref<2x8xi32, #tpu.memory_space<smem>>
    %57 = arith.index_cast %56 : i32 to index
    %c0_54 = arith.constant 0 : index
    %58 = vector.load %arg2[%57, %c0_54] : memref<50x128xf32, #tpu.memory_space<vmem>>, vector<1x128xf32>
    %c4_55 = arith.constant 4 : index
    %c1_56 = arith.constant 1 : index
    %c0_57 = arith.constant 0 : index
    %59 = vector.load %arg7[%c4_55, %c1_56, %c0_57] : memref<8x8x128xf32, #tpu.memory_space<vmem>>, vector<1x1x128xf32>
    %60 = vector.shape_cast %59 : vector<1x1x128xf32> to vector<1x128xf32>
    %61 = vector.shape_cast %58 : vector<1x128xf32> to vector<1x1x128xf32>
    tpu.vector_store %arg7[%c4_55, %c1_56, %c0_57], %61 {strides = array<i32>} : memref<8x8x128xf32, #tpu.memory_space<vmem>>, vector<1x1x128xf32>,
    %c0_58 = arith.constant 0 : index
    %c5 = arith.constant 5 : index
    %62 = memref.load %arg1[%c0_58, %c5] : memref<2x8xi32, #tpu.memory_space<smem>>
    %63 = arith.index_cast %62 : i32 to index
    %c0_59 = arith.constant 0 : index
    %64 = vector.load %arg2[%63, %c0_59] : memref<50x128xf32, #tpu.memory_space<vmem>>, vector<1x128xf32>
    %c5_60 = arith.constant 5 : index
    %c0_61 = arith.constant 0 : index
    %c0_62 = arith.constant 0 : index
    %65 = vector.load %arg7[%c5_60, %c0_61, %c0_62] : memref<8x8x128xf32, #tpu.memory_space<vmem>>, vector<1x1x128xf32>
    %66 = vector.shape_cast %65 : vector<1x1x128xf32> to vector<1x128xf32>
    %67 = vector.shape_cast %64 : vector<1x128xf32> to vector<1x1x128xf32>
    tpu.vector_store %arg7[%c5_60, %c0_61, %c0_62], %67 {strides = array<i32>} : memref<8x8x128xf32, #tpu.memory_space<vmem>>, vector<1x1x128xf32>,
    %c1_63 = arith.constant 1 : index
    %c5_64 = arith.constant 5 : index
    %68 = memref.load %arg1[%c1_63, %c5_64] : memref<2x8xi32, #tpu.memory_space<smem>>
    %69 = arith.index_cast %68 : i32 to index
    %c0_65 = arith.constant 0 : index
    %70 = vector.load %arg2[%69, %c0_65] : memref<50x128xf32, #tpu.memory_space<vmem>>, vector<1x128xf32>
    %c5_66 = arith.constant 5 : index
    %c1_67 = arith.constant 1 : index
    %c0_68 = arith.constant 0 : index
    %71 = vector.load %arg7[%c5_66, %c1_67, %c0_68] : memref<8x8x128xf32, #tpu.memory_space<vmem>>, vector<1x1x128xf32>
    %72 = vector.shape_cast %71 : vector<1x1x128xf32> to vector<1x128xf32>
    %73 = vector.shape_cast %70 : vector<1x128xf32> to vector<1x1x128xf32>
    tpu.vector_store %arg7[%c5_66, %c1_67, %c0_68], %73 {strides = array<i32>} : memref<8x8x128xf32, #tpu.memory_space<vmem>>, vector<1x1x128xf32>,
    %c0_69 = arith.constant 0 : index
    %c6 = arith.constant 6 : index
    %74 = memref.load %arg1[%c0_69, %c6] : memref<2x8xi32, #tpu.memory_space<smem>>
    %75 = arith.index_cast %74 : i32 to index
    %c0_70 = arith.constant 0 : index
    %76 = vector.load %arg2[%75, %c0_70] : memref<50x128xf32, #tpu.memory_space<vmem>>, vector<1x128xf32>
    %c6_71 = arith.constant 6 : index
    %c0_72 = arith.constant 0 : index
    %c0_73 = arith.constant 0 : index
    %77 = vector.load %arg7[%c6_71, %c0_72, %c0_73] : memref<8x8x128xf32, #tpu.memory_space<vmem>>, vector<1x1x128xf32>
    %78 = vector.shape_cast %77 : vector<1x1x128xf32> to vector<1x128xf32>
    %79 = vector.shape_cast %76 : vector<1x128xf32> to vector<1x1x128xf32>
    tpu.vector_store %arg7[%c6_71, %c0_72, %c0_73], %79 {strides = array<i32>} : memref<8x8x128xf32, #tpu.memory_space<vmem>>, vector<1x1x128xf32>,
    %c1_74 = arith.constant 1 : index
    %c6_75 = arith.constant 6 : index
    %80 = memref.load %arg1[%c1_74, %c6_75] : memref<2x8xi32, #tpu.memory_space<smem>>
    %81 = arith.index_cast %80 : i32 to index
    %c0_76 = arith.constant 0 : index
    %82 = vector.load %arg2[%81, %c0_76] : memref<50x128xf32, #tpu.memory_space<vmem>>, vector<1x128xf32>
    %c6_77 = arith.constant 6 : index
    %c1_78 = arith.constant 1 : index
    %c0_79 = arith.constant 0 : index
    %83 = vector.load %arg7[%c6_77, %c1_78, %c0_79] : memref<8x8x128xf32, #tpu.memory_space<vmem>>, vector<1x1x128xf32>
    %84 = vector.shape_cast %83 : vector<1x1x128xf32> to vector<1x128xf32>
    %85 = vector.shape_cast %82 : vector<1x128xf32> to vector<1x1x128xf32>
    tpu.vector_store %arg7[%c6_77, %c1_78, %c0_79], %85 {strides = array<i32>} : memref<8x8x128xf32, #tpu.memory_space<vmem>>, vector<1x1x128xf32>,
    %c0_80 = arith.constant 0 : index
    %c7 = arith.constant 7 : index
    %86 = memref.load %arg1[%c0_80, %c7] : memref<2x8xi32, #tpu.memory_space<smem>>
    %87 = arith.index_cast %86 : i32 to index
    %c0_81 = arith.constant 0 : index
    %88 = vector.load %arg2[%87, %c0_81] : memref<50x128xf32, #tpu.memory_space<vmem>>, vector<1x128xf32>
    %c7_82 = arith.constant 7 : index
    %c0_83 = arith.constant 0 : index
    %c0_84 = arith.constant 0 : index
    %89 = vector.load %arg7[%c7_82, %c0_83, %c0_84] : memref<8x8x128xf32, #tpu.memory_space<vmem>>, vector<1x1x128xf32>
    %90 = vector.shape_cast %89 : vector<1x1x128xf32> to vector<1x128xf32>
    %91 = vector.shape_cast %88 : vector<1x128xf32> to vector<1x1x128xf32>
    tpu.vector_store %arg7[%c7_82, %c0_83, %c0_84], %91 {strides = array<i32>} : memref<8x8x128xf32, #tpu.memory_space<vmem>>, vector<1x1x128xf32>,
    %c1_85 = arith.constant 1 : index
    %c7_86 = arith.constant 7 : index
    %92 = memref.load %arg1[%c1_85, %c7_86] : memref<2x8xi32, #tpu.memory_space<smem>>
    %93 = arith.index_cast %92 : i32 to index
    %c0_87 = arith.constant 0 : index
    %94 = vector.load %arg2[%93, %c0_87] : memref<50x128xf32, #tpu.memory_space<vmem>>, vector<1x128xf32>
    %c7_88 = arith.constant 7 : index
    %c1_89 = arith.constant 1 : index
    %c0_90 = arith.constant 0 : index
    %95 = vector.load %arg7[%c7_88, %c1_89, %c0_90] : memref<8x8x128xf32, #tpu.memory_space<vmem>>, vector<1x1x128xf32>
    %96 = vector.shape_cast %95 : vector<1x1x128xf32> to vector<1x128xf32>
    %97 = vector.shape_cast %94 : vector<1x128xf32> to vector<1x1x128xf32>
    tpu.vector_store %arg7[%c7_88, %c1_89, %c0_90], %97 {strides = array<i32>} : memref<8x8x128xf32, #tpu.memory_space<vmem>>, vector<1x1x128xf32>,
    %c0_91 = arith.constant 0 : index
    %c0_92 = arith.constant 0 : index
    %98 = vector.load %arg3[%c0_91, %c0_92] : memref<32x128xbf16, #tpu.memory_space<vmem>>, vector<32x128xbf16>
    %c0_93 = arith.constant 0 : index
    %c0_94 = arith.constant 0 : index
    %99 = vector.load %arg4[%c0_93, %c0_94] : memref<32x128xbf16, #tpu.memory_space<vmem>>, vector<32x128xbf16>
    %c0_95 = arith.constant 0 : index
    %c0_96 = arith.constant 0 : index
    %100 = vector.load %arg5[%c0_95, %c0_96] : memref<1x128xf32, #tpu.memory_space<vmem>>, vector<1x128xf32>
    %cst_97 = arith.constant 0.000000e+00 : f32
    %101 = vector.broadcast %cst_97 : f32 to vector<8x32xf32>
    %cst_98 = arith.constant 0.000000e+00 : f32
    %102 = vector.broadcast %cst_98 : f32 to vector<8x32xf32>
    %103 = arith.truncf %101 : vector<8x32xf32> to vector<8x32xbf16>
    %c0_99 = arith.constant 0 : index
    %c0_100 = arith.constant 0 : index
    %c0_101 = arith.constant 0 : index
    %104 = vector.load %arg7[%c0_99, %c0_100, %c0_101] : memref<8x8x128xf32, #tpu.memory_space<vmem>>, vector<1x8x128xf32>
    %105 = vector.shape_cast %104 : vector<1x8x128xf32> to vector<8x128xf32>
    %cst_102 = arith.constant dense<0.000000e+00> : vector<8x128xf32>
    %106 = tpu.matmul %103, %98, %cst_102 {dimension_numbers = #tpu.dot_dimension_numbers<[1], [0], [0], [1], [0, 0, 1, 1], [], []>} : vector<8x32xbf16>, vector<32x128xbf16>, vector<8x128xf32> -> vector<8x128xf32>
    %107 = arith.addf %105, %106 : vector<8x128xf32>
    %108 = arith.negf %107 : vector<8x128xf32>
    %109 = math.exp %108 : vector<8x128xf32>
    %cst_103 = arith.constant 1.000000e+00 : f32
    %110 = vector.broadcast %cst_103 : f32 to vector<8x128xf32>
    %111 = arith.addf %110, %109 : vector<8x128xf32>
    %112 = arith.divf %110, %111 : vector<8x128xf32>
    %113 = math.tanh %107 : vector<8x128xf32>
    %114 = vector.extract_strided_slice %112 {offsets = [0, 0], sizes = [8, 32], strides = [1, 1]} : vector<8x128xf32> to vector<8x32xf32>
    %115 = vector.extract_strided_slice %112 {offsets = [0, 32], sizes = [8, 32], strides = [1, 1]} : vector<8x128xf32> to vector<8x32xf32>
    %116 = vector.extract_strided_slice %113 {offsets = [0, 64], sizes = [8, 32], strides = [1, 1]} : vector<8x128xf32> to vector<8x32xf32>
    %117 = vector.extract_strided_slice %112 {offsets = [0, 96], sizes = [8, 32], strides = [1, 1]} : vector<8x128xf32> to vector<8x32xf32>
    %118 = arith.mulf %115, %102 : vector<8x32xf32>
    %119 = arith.mulf %114, %116 : vector<8x32xf32>
    %120 = arith.addf %118, %119 : vector<8x32xf32>
    %121 = math.tanh %120 : vector<8x32xf32>
    %122 = arith.mulf %117, %121 : vector<8x32xf32>
    %123 = arith.truncf %122 : vector<8x32xf32> to vector<8x32xbf16>
    %cst_104 = arith.constant dense<0.000000e+00> : vector<8x128xf32>
    %124 = tpu.matmul %123, %99, %cst_104 {dimension_numbers = #tpu.dot_dimension_numbers<[1], [0], [0], [1], [0, 0, 1, 1], [], []>} : vector<8x32xbf16>, vector<32x128xbf16>, vector<8x128xf32> -> vector<8x128xf32>
    %125 = vector.broadcast %100 : vector<1x128xf32> to vector<8x128xf32>
    %126 = arith.addf %124, %125 : vector<8x128xf32>
    %cst_105 = arith.constant dense<0xFF800000> : vector<8xf32>
    %127 = vector.multi_reduction <maximumf>, %126, %cst_105 [1] : vector<8x128xf32> to vector<8xf32>
    %128 = vector.shape_cast %127 : vector<8xf32> to vector<8x1xf32>
    %129 = vector.broadcast %128 : vector<8x1xf32> to vector<8x128xf32>
    %130 = arith.subf %126, %129 : vector<8x128xf32>
    %131 = math.exp %130 : vector<8x128xf32>
    %cst_106 = arith.constant dense<0.000000e+00> : vector<8xf32>
    %132 = vector.multi_reduction <add>, %131, %cst_106 [1] : vector<8x128xf32> to vector<8xf32>
    %133 = vector.shape_cast %132 : vector<8xf32> to vector<8x1xf32>
    %134 = math.log %133 : vector<8x1xf32>
    %135 = arith.addf %134, %128 : vector<8x1xf32>
    %136 = vector.broadcast %135 : vector<8x1xf32> to vector<8x128xf32>
    %137 = arith.subf %126, %136 : vector<8x128xf32>
    %c0_107 = arith.constant 0 : index
    %c0_108 = arith.constant 0 : index
    %c0_109 = arith.constant 0 : index
    %138 = vector.load %arg6[%c0_107, %c0_108, %c0_109] : memref<8x8x128xf32, #tpu.memory_space<vmem>>, vector<8x1x128xf32>
    %139 = vector.shape_cast %138 : vector<8x1x128xf32> to vector<8x128xf32>
    %140 = vector.shape_cast %137 : vector<8x128xf32> to vector<8x1x128xf32>
    tpu.vector_store %arg6[%c0_107, %c0_108, %c0_109], %140 {strides = array<i32>} : memref<8x8x128xf32, #tpu.memory_space<vmem>>, vector<8x1x128xf32>,
    %c1_110 = arith.constant 1 : index
    %c0_111 = arith.constant 0 : index
    %c0_112 = arith.constant 0 : index
    %141 = vector.load %arg7[%c1_110, %c0_111, %c0_112] : memref<8x8x128xf32, #tpu.memory_space<vmem>>, vector<1x8x128xf32>
    %142 = vector.shape_cast %141 : vector<1x8x128xf32> to vector<8x128xf32>
    %cst_113 = arith.constant dense<0.000000e+00> : vector<8x128xf32>
    %143 = tpu.matmul %123, %98, %cst_113 {dimension_numbers = #tpu.dot_dimension_numbers<[1], [0], [0], [1], [0, 0, 1, 1], [], []>} : vector<8x32xbf16>, vector<32x128xbf16>, vector<8x128xf32> -> vector<8x128xf32>
    %144 = arith.addf %142, %143 : vector<8x128xf32>
    %145 = arith.negf %144 : vector<8x128xf32>
    %146 = math.exp %145 : vector<8x128xf32>
    %cst_114 = arith.constant 1.000000e+00 : f32
    %147 = vector.broadcast %cst_114 : f32 to vector<8x128xf32>
    %148 = arith.addf %147, %146 : vector<8x128xf32>
    %149 = arith.divf %147, %148 : vector<8x128xf32>
    %150 = math.tanh %144 : vector<8x128xf32>
    %151 = vector.extract_strided_slice %149 {offsets = [0, 0], sizes = [8, 32], strides = [1, 1]} : vector<8x128xf32> to vector<8x32xf32>
    %152 = vector.extract_strided_slice %149 {offsets = [0, 32], sizes = [8, 32], strides = [1, 1]} : vector<8x128xf32> to vector<8x32xf32>
    %153 = vector.extract_strided_slice %150 {offsets = [0, 64], sizes = [8, 32], strides = [1, 1]} : vector<8x128xf32> to vector<8x32xf32>
    %154 = vector.extract_strided_slice %149 {offsets = [0, 96], sizes = [8, 32], strides = [1, 1]} : vector<8x128xf32> to vector<8x32xf32>
    %155 = arith.mulf %152, %120 : vector<8x32xf32>
    %156 = arith.mulf %151, %153 : vector<8x32xf32>
    %157 = arith.addf %155, %156 : vector<8x32xf32>
    %158 = math.tanh %157 : vector<8x32xf32>
    %159 = arith.mulf %154, %158 : vector<8x32xf32>
    %160 = arith.truncf %159 : vector<8x32xf32> to vector<8x32xbf16>
    %cst_115 = arith.constant dense<0.000000e+00> : vector<8x128xf32>
    %161 = tpu.matmul %160, %99, %cst_115 {dimension_numbers = #tpu.dot_dimension_numbers<[1], [0], [0], [1], [0, 0, 1, 1], [], []>} : vector<8x32xbf16>, vector<32x128xbf16>, vector<8x128xf32> -> vector<8x128xf32>
    %162 = vector.broadcast %100 : vector<1x128xf32> to vector<8x128xf32>
    %163 = arith.addf %161, %162 : vector<8x128xf32>
    %cst_116 = arith.constant dense<0xFF800000> : vector<8xf32>
    %164 = vector.multi_reduction <maximumf>, %163, %cst_116 [1] : vector<8x128xf32> to vector<8xf32>
    %165 = vector.shape_cast %164 : vector<8xf32> to vector<8x1xf32>
    %166 = vector.broadcast %165 : vector<8x1xf32> to vector<8x128xf32>
    %167 = arith.subf %163, %166 : vector<8x128xf32>
    %168 = math.exp %167 : vector<8x128xf32>
    %cst_117 = arith.constant dense<0.000000e+00> : vector<8xf32>
    %169 = vector.multi_reduction <add>, %168, %cst_117 [1] : vector<8x128xf32> to vector<8xf32>
    %170 = vector.shape_cast %169 : vector<8xf32> to vector<8x1xf32>
    %171 = math.log %170 : vector<8x1xf32>
    %172 = arith.addf %171, %165 : vector<8x1xf32>
    %173 = vector.broadcast %172 : vector<8x1xf32> to vector<8x128xf32>
    %174 = arith.subf %163, %173 : vector<8x128xf32>
    %c0_118 = arith.constant 0 : index
    %c1_119 = arith.constant 1 : index
    %c0_120 = arith.constant 0 : index
    %175 = vector.load %arg6[%c0_118, %c1_119, %c0_120] : memref<8x8x128xf32, #tpu.memory_space<vmem>>, vector<8x1x128xf32>
    %176 = vector.shape_cast %175 : vector<8x1x128xf32> to vector<8x128xf32>
    %177 = vector.shape_cast %174 : vector<8x128xf32> to vector<8x1x128xf32>
    tpu.vector_store %arg6[%c0_118, %c1_119, %c0_120], %177 {strides = array<i32>} : memref<8x8x128xf32, #tpu.memory_space<vmem>>, vector<8x1x128xf32>,
    %c2_121 = arith.constant 2 : index
    %c0_122 = arith.constant 0 : index
    %c0_123 = arith.constant 0 : index
    %178 = vector.load %arg7[%c2_121, %c0_122, %c0_123] : memref<8x8x128xf32, #tpu.memory_space<vmem>>, vector<1x8x128xf32>
    %179 = vector.shape_cast %178 : vector<1x8x128xf32> to vector<8x128xf32>
    %cst_124 = arith.constant dense<0.000000e+00> : vector<8x128xf32>
    %180 = tpu.matmul %160, %98, %cst_124 {dimension_numbers = #tpu.dot_dimension_numbers<[1], [0], [0], [1], [0, 0, 1, 1], [], []>} : vector<8x32xbf16>, vector<32x128xbf16>, vector<8x128xf32> -> vector<8x128xf32>
    %181 = arith.addf %179, %180 : vector<8x128xf32>
    %182 = arith.negf %181 : vector<8x128xf32>
    %183 = math.exp %182 : vector<8x128xf32>
    %cst_125 = arith.constant 1.000000e+00 : f32
    %184 = vector.broadcast %cst_125 : f32 to vector<8x128xf32>
    %185 = arith.addf %184, %183 : vector<8x128xf32>
    %186 = arith.divf %184, %185 : vector<8x128xf32>
    %187 = math.tanh %181 : vector<8x128xf32>
    %188 = vector.extract_strided_slice %186 {offsets = [0, 0], sizes = [8, 32], strides = [1, 1]} : vector<8x128xf32> to vector<8x32xf32>
    %189 = vector.extract_strided_slice %186 {offsets = [0, 32], sizes = [8, 32], strides = [1, 1]} : vector<8x128xf32> to vector<8x32xf32>
    %190 = vector.extract_strided_slice %187 {offsets = [0, 64], sizes = [8, 32], strides = [1, 1]} : vector<8x128xf32> to vector<8x32xf32>
    %191 = vector.extract_strided_slice %186 {offsets = [0, 96], sizes = [8, 32], strides = [1, 1]} : vector<8x128xf32> to vector<8x32xf32>
    %192 = arith.mulf %189, %157 : vector<8x32xf32>
    %193 = arith.mulf %188, %190 : vector<8x32xf32>
    %194 = arith.addf %192, %193 : vector<8x32xf32>
    %195 = math.tanh %194 : vector<8x32xf32>
    %196 = arith.mulf %191, %195 : vector<8x32xf32>
    %197 = arith.truncf %196 : vector<8x32xf32> to vector<8x32xbf16>
    %cst_126 = arith.constant dense<0.000000e+00> : vector<8x128xf32>
    %198 = tpu.matmul %197, %99, %cst_126 {dimension_numbers = #tpu.dot_dimension_numbers<[1], [0], [0], [1], [0, 0, 1, 1], [], []>} : vector<8x32xbf16>, vector<32x128xbf16>, vector<8x128xf32> -> vector<8x128xf32>
    %199 = vector.broadcast %100 : vector<1x128xf32> to vector<8x128xf32>
    %200 = arith.addf %198, %199 : vector<8x128xf32>
    %cst_127 = arith.constant dense<0xFF800000> : vector<8xf32>
    %201 = vector.multi_reduction <maximumf>, %200, %cst_127 [1] : vector<8x128xf32> to vector<8xf32>
    %202 = vector.shape_cast %201 : vector<8xf32> to vector<8x1xf32>
    %203 = vector.broadcast %202 : vector<8x1xf32> to vector<8x128xf32>
    %204 = arith.subf %200, %203 : vector<8x128xf32>
    %205 = math.exp %204 : vector<8x128xf32>
    %cst_128 = arith.constant dense<0.000000e+00> : vector<8xf32>
    %206 = vector.multi_reduction <add>, %205, %cst_128 [1] : vector<8x128xf32> to vector<8xf32>
    %207 = vector.shape_cast %206 : vector<8xf32> to vector<8x1xf32>
    %208 = math.log %207 : vector<8x1xf32>
    %209 = arith.addf %208, %202 : vector<8x1xf32>
    %210 = vector.broadcast %209 : vector<8x1xf32> to vector<8x128xf32>
    %211 = arith.subf %200, %210 : vector<8x128xf32>
    %c0_129 = arith.constant 0 : index
    %c2_130 = arith.constant 2 : index
    %c0_131 = arith.constant 0 : index
    %212 = vector.load %arg6[%c0_129, %c2_130, %c0_131] : memref<8x8x128xf32, #tpu.memory_space<vmem>>, vector<8x1x128xf32>
    %213 = vector.shape_cast %212 : vector<8x1x128xf32> to vector<8x128xf32>
    %214 = vector.shape_cast %211 : vector<8x128xf32> to vector<8x1x128xf32>
    tpu.vector_store %arg6[%c0_129, %c2_130, %c0_131], %214 {strides = array<i32>} : memref<8x8x128xf32, #tpu.memory_space<vmem>>, vector<8x1x128xf32>,
    %c3_132 = arith.constant 3 : index
    %c0_133 = arith.constant 0 : index
    %c0_134 = arith.constant 0 : index
    %215 = vector.load %arg7[%c3_132, %c0_133, %c0_134] : memref<8x8x128xf32, #tpu.memory_space<vmem>>, vector<1x8x128xf32>
    %216 = vector.shape_cast %215 : vector<1x8x128xf32> to vector<8x128xf32>
    %cst_135 = arith.constant dense<0.000000e+00> : vector<8x128xf32>
    %217 = tpu.matmul %197, %98, %cst_135 {dimension_numbers = #tpu.dot_dimension_numbers<[1], [0], [0], [1], [0, 0, 1, 1], [], []>} : vector<8x32xbf16>, vector<32x128xbf16>, vector<8x128xf32> -> vector<8x128xf32>
    %218 = arith.addf %216, %217 : vector<8x128xf32>
    %219 = arith.negf %218 : vector<8x128xf32>
    %220 = math.exp %219 : vector<8x128xf32>
    %cst_136 = arith.constant 1.000000e+00 : f32
    %221 = vector.broadcast %cst_136 : f32 to vector<8x128xf32>
    %222 = arith.addf %221, %220 : vector<8x128xf32>
    %223 = arith.divf %221, %222 : vector<8x128xf32>
    %224 = math.tanh %218 : vector<8x128xf32>
    %225 = vector.extract_strided_slice %223 {offsets = [0, 0], sizes = [8, 32], strides = [1, 1]} : vector<8x128xf32> to vector<8x32xf32>
    %226 = vector.extract_strided_slice %223 {offsets = [0, 32], sizes = [8, 32], strides = [1, 1]} : vector<8x128xf32> to vector<8x32xf32>
    %227 = vector.extract_strided_slice %224 {offsets = [0, 64], sizes = [8, 32], strides = [1, 1]} : vector<8x128xf32> to vector<8x32xf32>
    %228 = vector.extract_strided_slice %223 {offsets = [0, 96], sizes = [8, 32], strides = [1, 1]} : vector<8x128xf32> to vector<8x32xf32>
    %229 = arith.mulf %226, %194 : vector<8x32xf32>
    %230 = arith.mulf %225, %227 : vector<8x32xf32>
    %231 = arith.addf %229, %230 : vector<8x32xf32>
    %232 = math.tanh %231 : vector<8x32xf32>
    %233 = arith.mulf %228, %232 : vector<8x32xf32>
    %234 = arith.truncf %233 : vector<8x32xf32> to vector<8x32xbf16>
    %cst_137 = arith.constant dense<0.000000e+00> : vector<8x128xf32>
    %235 = tpu.matmul %234, %99, %cst_137 {dimension_numbers = #tpu.dot_dimension_numbers<[1], [0], [0], [1], [0, 0, 1, 1], [], []>} : vector<8x32xbf16>, vector<32x128xbf16>, vector<8x128xf32> -> vector<8x128xf32>
    %236 = vector.broadcast %100 : vector<1x128xf32> to vector<8x128xf32>
    %237 = arith.addf %235, %236 : vector<8x128xf32>
    %cst_138 = arith.constant dense<0xFF800000> : vector<8xf32>
    %238 = vector.multi_reduction <maximumf>, %237, %cst_138 [1] : vector<8x128xf32> to vector<8xf32>
    %239 = vector.shape_cast %238 : vector<8xf32> to vector<8x1xf32>
    %240 = vector.broadcast %239 : vector<8x1xf32> to vector<8x128xf32>
    %241 = arith.subf %237, %240 : vector<8x128xf32>
    %242 = math.exp %241 : vector<8x128xf32>
    %cst_139 = arith.constant dense<0.000000e+00> : vector<8xf32>
    %243 = vector.multi_reduction <add>, %242, %cst_139 [1] : vector<8x128xf32> to vector<8xf32>
    %244 = vector.shape_cast %243 : vector<8xf32> to vector<8x1xf32>
    %245 = math.log %244 : vector<8x1xf32>
    %246 = arith.addf %245, %239 : vector<8x1xf32>
    %247 = vector.broadcast %246 : vector<8x1xf32> to vector<8x128xf32>
    %248 = arith.subf %237, %247 : vector<8x128xf32>
    %c0_140 = arith.constant 0 : index
    %c3_141 = arith.constant 3 : index
    %c0_142 = arith.constant 0 : index
    %249 = vector.load %arg6[%c0_140, %c3_141, %c0_142] : memref<8x8x128xf32, #tpu.memory_space<vmem>>, vector<8x1x128xf32>
    %250 = vector.shape_cast %249 : vector<8x1x128xf32> to vector<8x128xf32>
    %251 = vector.shape_cast %248 : vector<8x128xf32> to vector<8x1x128xf32>
    tpu.vector_store %arg6[%c0_140, %c3_141, %c0_142], %251 {strides = array<i32>} : memref<8x8x128xf32, #tpu.memory_space<vmem>>, vector<8x1x128xf32>,
    %c4_143 = arith.constant 4 : index
    %c0_144 = arith.constant 0 : index
    %c0_145 = arith.constant 0 : index
    %252 = vector.load %arg7[%c4_143, %c0_144, %c0_145] : memref<8x8x128xf32, #tpu.memory_space<vmem>>, vector<1x8x128xf32>
    %253 = vector.shape_cast %252 : vector<1x8x128xf32> to vector<8x128xf32>
    %cst_146 = arith.constant dense<0.000000e+00> : vector<8x128xf32>
    %254 = tpu.matmul %234, %98, %cst_146 {dimension_numbers = #tpu.dot_dimension_numbers<[1], [0], [0], [1], [0, 0, 1, 1], [], []>} : vector<8x32xbf16>, vector<32x128xbf16>, vector<8x128xf32> -> vector<8x128xf32>
    %255 = arith.addf %253, %254 : vector<8x128xf32>
    %256 = arith.negf %255 : vector<8x128xf32>
    %257 = math.exp %256 : vector<8x128xf32>
    %cst_147 = arith.constant 1.000000e+00 : f32
    %258 = vector.broadcast %cst_147 : f32 to vector<8x128xf32>
    %259 = arith.addf %258, %257 : vector<8x128xf32>
    %260 = arith.divf %258, %259 : vector<8x128xf32>
    %261 = math.tanh %255 : vector<8x128xf32>
    %262 = vector.extract_strided_slice %260 {offsets = [0, 0], sizes = [8, 32], strides = [1, 1]} : vector<8x128xf32> to vector<8x32xf32>
    %263 = vector.extract_strided_slice %260 {offsets = [0, 32], sizes = [8, 32], strides = [1, 1]} : vector<8x128xf32> to vector<8x32xf32>
    %264 = vector.extract_strided_slice %261 {offsets = [0, 64], sizes = [8, 32], strides = [1, 1]} : vector<8x128xf32> to vector<8x32xf32>
    %265 = vector.extract_strided_slice %260 {offsets = [0, 96], sizes = [8, 32], strides = [1, 1]} : vector<8x128xf32> to vector<8x32xf32>
    %266 = arith.mulf %263, %231 : vector<8x32xf32>
    %267 = arith.mulf %262, %264 : vector<8x32xf32>
    %268 = arith.addf %266, %267 : vector<8x32xf32>
    %269 = math.tanh %268 : vector<8x32xf32>
    %270 = arith.mulf %265, %269 : vector<8x32xf32>
    %271 = arith.truncf %270 : vector<8x32xf32> to vector<8x32xbf16>
    %cst_148 = arith.constant dense<0.000000e+00> : vector<8x128xf32>
    %272 = tpu.matmul %271, %99, %cst_148 {dimension_numbers = #tpu.dot_dimension_numbers<[1], [0], [0], [1], [0, 0, 1, 1], [], []>} : vector<8x32xbf16>, vector<32x128xbf16>, vector<8x128xf32> -> vector<8x128xf32>
    %273 = vector.broadcast %100 : vector<1x128xf32> to vector<8x128xf32>
    %274 = arith.addf %272, %273 : vector<8x128xf32>
    %cst_149 = arith.constant dense<0xFF800000> : vector<8xf32>
    %275 = vector.multi_reduction <maximumf>, %274, %cst_149 [1] : vector<8x128xf32> to vector<8xf32>
    %276 = vector.shape_cast %275 : vector<8xf32> to vector<8x1xf32>
    %277 = vector.broadcast %276 : vector<8x1xf32> to vector<8x128xf32>
    %278 = arith.subf %274, %277 : vector<8x128xf32>
    %279 = math.exp %278 : vector<8x128xf32>
    %cst_150 = arith.constant dense<0.000000e+00> : vector<8xf32>
    %280 = vector.multi_reduction <add>, %279, %cst_150 [1] : vector<8x128xf32> to vector<8xf32>
    %281 = vector.shape_cast %280 : vector<8xf32> to vector<8x1xf32>
    %282 = math.log %281 : vector<8x1xf32>
    %283 = arith.addf %282, %276 : vector<8x1xf32>
    %284 = vector.broadcast %283 : vector<8x1xf32> to vector<8x128xf32>
    %285 = arith.subf %274, %284 : vector<8x128xf32>
    %c0_151 = arith.constant 0 : index
    %c4_152 = arith.constant 4 : index
    %c0_153 = arith.constant 0 : index
    %286 = vector.load %arg6[%c0_151, %c4_152, %c0_153] : memref<8x8x128xf32, #tpu.memory_space<vmem>>, vector<8x1x128xf32>
    %287 = vector.shape_cast %286 : vector<8x1x128xf32> to vector<8x128xf32>
    %288 = vector.shape_cast %285 : vector<8x128xf32> to vector<8x1x128xf32>
    tpu.vector_store %arg6[%c0_151, %c4_152, %c0_153], %288 {strides = array<i32>} : memref<8x8x128xf32, #tpu.memory_space<vmem>>, vector<8x1x128xf32>,
    %c5_154 = arith.constant 5 : index
    %c0_155 = arith.constant 0 : index
    %c0_156 = arith.constant 0 : index
    %289 = vector.load %arg7[%c5_154, %c0_155, %c0_156] : memref<8x8x128xf32, #tpu.memory_space<vmem>>, vector<1x8x128xf32>
    %290 = vector.shape_cast %289 : vector<1x8x128xf32> to vector<8x128xf32>
    %cst_157 = arith.constant dense<0.000000e+00> : vector<8x128xf32>
    %291 = tpu.matmul %271, %98, %cst_157 {dimension_numbers = #tpu.dot_dimension_numbers<[1], [0], [0], [1], [0, 0, 1, 1], [], []>} : vector<8x32xbf16>, vector<32x128xbf16>, vector<8x128xf32> -> vector<8x128xf32>
    %292 = arith.addf %290, %291 : vector<8x128xf32>
    %293 = arith.negf %292 : vector<8x128xf32>
    %294 = math.exp %293 : vector<8x128xf32>
    %cst_158 = arith.constant 1.000000e+00 : f32
    %295 = vector.broadcast %cst_158 : f32 to vector<8x128xf32>
    %296 = arith.addf %295, %294 : vector<8x128xf32>
    %297 = arith.divf %295, %296 : vector<8x128xf32>
    %298 = math.tanh %292 : vector<8x128xf32>
    %299 = vector.extract_strided_slice %297 {offsets = [0, 0], sizes = [8, 32], strides = [1, 1]} : vector<8x128xf32> to vector<8x32xf32>
    %300 = vector.extract_strided_slice %297 {offsets = [0, 32], sizes = [8, 32], strides = [1, 1]} : vector<8x128xf32> to vector<8x32xf32>
    %301 = vector.extract_strided_slice %298 {offsets = [0, 64], sizes = [8, 32], strides = [1, 1]} : vector<8x128xf32> to vector<8x32xf32>
    %302 = vector.extract_strided_slice %297 {offsets = [0, 96], sizes = [8, 32], strides = [1, 1]} : vector<8x128xf32> to vector<8x32xf32>
    %303 = arith.mulf %300, %268 : vector<8x32xf32>
    %304 = arith.mulf %299, %301 : vector<8x32xf32>
    %305 = arith.addf %303, %304 : vector<8x32xf32>
    %306 = math.tanh %305 : vector<8x32xf32>
    %307 = arith.mulf %302, %306 : vector<8x32xf32>
    %308 = arith.truncf %307 : vector<8x32xf32> to vector<8x32xbf16>
    %cst_159 = arith.constant dense<0.000000e+00> : vector<8x128xf32>
    %309 = tpu.matmul %308, %99, %cst_159 {dimension_numbers = #tpu.dot_dimension_numbers<[1], [0], [0], [1], [0, 0, 1, 1], [], []>} : vector<8x32xbf16>, vector<32x128xbf16>, vector<8x128xf32> -> vector<8x128xf32>
    %310 = vector.broadcast %100 : vector<1x128xf32> to vector<8x128xf32>
    %311 = arith.addf %309, %310 : vector<8x128xf32>
    %cst_160 = arith.constant dense<0xFF800000> : vector<8xf32>
    %312 = vector.multi_reduction <maximumf>, %311, %cst_160 [1] : vector<8x128xf32> to vector<8xf32>
    %313 = vector.shape_cast %312 : vector<8xf32> to vector<8x1xf32>
    %314 = vector.broadcast %313 : vector<8x1xf32> to vector<8x128xf32>
    %315 = arith.subf %311, %314 : vector<8x128xf32>
    %316 = math.exp %315 : vector<8x128xf32>
    %cst_161 = arith.constant dense<0.000000e+00> : vector<8xf32>
    %317 = vector.multi_reduction <add>, %316, %cst_161 [1] : vector<8x128xf32> to vector<8xf32>
    %318 = vector.shape_cast %317 : vector<8xf32> to vector<8x1xf32>
    %319 = math.log %318 : vector<8x1xf32>
    %320 = arith.addf %319, %313 : vector<8x1xf32>
    %321 = vector.broadcast %320 : vector<8x1xf32> to vector<8x128xf32>
    %322 = arith.subf %311, %321 : vector<8x128xf32>
    %c0_162 = arith.constant 0 : index
    %c5_163 = arith.constant 5 : index
    %c0_164 = arith.constant 0 : index
    %323 = vector.load %arg6[%c0_162, %c5_163, %c0_164] : memref<8x8x128xf32, #tpu.memory_space<vmem>>, vector<8x1x128xf32>
    %324 = vector.shape_cast %323 : vector<8x1x128xf32> to vector<8x128xf32>
    %325 = vector.shape_cast %322 : vector<8x128xf32> to vector<8x1x128xf32>
    tpu.vector_store %arg6[%c0_162, %c5_163, %c0_164], %325 {strides = array<i32>} : memref<8x8x128xf32, #tpu.memory_space<vmem>>, vector<8x1x128xf32>,
    %c6_165 = arith.constant 6 : index
    %c0_166 = arith.constant 0 : index
    %c0_167 = arith.constant 0 : index
    %326 = vector.load %arg7[%c6_165, %c0_166, %c0_167] : memref<8x8x128xf32, #tpu.memory_space<vmem>>, vector<1x8x128xf32>
    %327 = vector.shape_cast %326 : vector<1x8x128xf32> to vector<8x128xf32>
    %cst_168 = arith.constant dense<0.000000e+00> : vector<8x128xf32>
    %328 = tpu.matmul %308, %98, %cst_168 {dimension_numbers = #tpu.dot_dimension_numbers<[1], [0], [0], [1], [0, 0, 1, 1], [], []>} : vector<8x32xbf16>, vector<32x128xbf16>, vector<8x128xf32> -> vector<8x128xf32>
    %329 = arith.addf %327, %328 : vector<8x128xf32>
    %330 = arith.negf %329 : vector<8x128xf32>
    %331 = math.exp %330 : vector<8x128xf32>
    %cst_169 = arith.constant 1.000000e+00 : f32
    %332 = vector.broadcast %cst_169 : f32 to vector<8x128xf32>
    %333 = arith.addf %332, %331 : vector<8x128xf32>
    %334 = arith.divf %332, %333 : vector<8x128xf32>
    %335 = math.tanh %329 : vector<8x128xf32>
    %336 = vector.extract_strided_slice %334 {offsets = [0, 0], sizes = [8, 32], strides = [1, 1]} : vector<8x128xf32> to vector<8x32xf32>
    %337 = vector.extract_strided_slice %334 {offsets = [0, 32], sizes = [8, 32], strides = [1, 1]} : vector<8x128xf32> to vector<8x32xf32>
    %338 = vector.extract_strided_slice %335 {offsets = [0, 64], sizes = [8, 32], strides = [1, 1]} : vector<8x128xf32> to vector<8x32xf32>
    %339 = vector.extract_strided_slice %334 {offsets = [0, 96], sizes = [8, 32], strides = [1, 1]} : vector<8x128xf32> to vector<8x32xf32>
    %340 = arith.mulf %337, %305 : vector<8x32xf32>
    %341 = arith.mulf %336, %338 : vector<8x32xf32>
    %342 = arith.addf %340, %341 : vector<8x32xf32>
    %343 = math.tanh %342 : vector<8x32xf32>
    %344 = arith.mulf %339, %343 : vector<8x32xf32>
    %345 = arith.truncf %344 : vector<8x32xf32> to vector<8x32xbf16>
    %cst_170 = arith.constant dense<0.000000e+00> : vector<8x128xf32>
    %346 = tpu.matmul %345, %99, %cst_170 {dimension_numbers = #tpu.dot_dimension_numbers<[1], [0], [0], [1], [0, 0, 1, 1], [], []>} : vector<8x32xbf16>, vector<32x128xbf16>, vector<8x128xf32> -> vector<8x128xf32>
    %347 = vector.broadcast %100 : vector<1x128xf32> to vector<8x128xf32>
    %348 = arith.addf %346, %347 : vector<8x128xf32>
    %cst_171 = arith.constant dense<0xFF800000> : vector<8xf32>
    %349 = vector.multi_reduction <maximumf>, %348, %cst_171 [1] : vector<8x128xf32> to vector<8xf32>
    %350 = vector.shape_cast %349 : vector<8xf32> to vector<8x1xf32>
    %351 = vector.broadcast %350 : vector<8x1xf32> to vector<8x128xf32>
    %352 = arith.subf %348, %351 : vector<8x128xf32>
    %353 = math.exp %352 : vector<8x128xf32>
    %cst_172 = arith.constant dense<0.000000e+00> : vector<8xf32>
    %354 = vector.multi_reduction <add>, %353, %cst_172 [1] : vector<8x128xf32> to vector<8xf32>
    %355 = vector.shape_cast %354 : vector<8xf32> to vector<8x1xf32>
    %356 = math.log %355 : vector<8x1xf32>
    %357 = arith.addf %356, %350 : vector<8x1xf32>
    %358 = vector.broadcast %357 : vector<8x1xf32> to vector<8x128xf32>
    %359 = arith.subf %348, %358 : vector<8x128xf32>
    %c0_173 = arith.constant 0 : index
    %c6_174 = arith.constant 6 : index
    %c0_175 = arith.constant 0 : index
    %360 = vector.load %arg6[%c0_173, %c6_174, %c0_175] : memref<8x8x128xf32, #tpu.memory_space<vmem>>, vector<8x1x128xf32>
    %361 = vector.shape_cast %360 : vector<8x1x128xf32> to vector<8x128xf32>
    %362 = vector.shape_cast %359 : vector<8x128xf32> to vector<8x1x128xf32>
    tpu.vector_store %arg6[%c0_173, %c6_174, %c0_175], %362 {strides = array<i32>} : memref<8x8x128xf32, #tpu.memory_space<vmem>>, vector<8x1x128xf32>,
    %c7_176 = arith.constant 7 : index
    %c0_177 = arith.constant 0 : index
    %c0_178 = arith.constant 0 : index
    %363 = vector.load %arg7[%c7_176, %c0_177, %c0_178] : memref<8x8x128xf32, #tpu.memory_space<vmem>>, vector<1x8x128xf32>
    %364 = vector.shape_cast %363 : vector<1x8x128xf32> to vector<8x128xf32>
    %cst_179 = arith.constant dense<0.000000e+00> : vector<8x128xf32>
    %365 = tpu.matmul %345, %98, %cst_179 {dimension_numbers = #tpu.dot_dimension_numbers<[1], [0], [0], [1], [0, 0, 1, 1], [], []>} : vector<8x32xbf16>, vector<32x128xbf16>, vector<8x128xf32> -> vector<8x128xf32>
    %366 = arith.addf %364, %365 : vector<8x128xf32>
    %367 = arith.negf %366 : vector<8x128xf32>
    %368 = math.exp %367 : vector<8x128xf32>
    %cst_180 = arith.constant 1.000000e+00 : f32
    %369 = vector.broadcast %cst_180 : f32 to vector<8x128xf32>
    %370 = arith.addf %369, %368 : vector<8x128xf32>
    %371 = arith.divf %369, %370 : vector<8x128xf32>
    %372 = math.tanh %366 : vector<8x128xf32>
    %373 = vector.extract_strided_slice %371 {offsets = [0, 0], sizes = [8, 32], strides = [1, 1]} : vector<8x128xf32> to vector<8x32xf32>
    %374 = vector.extract_strided_slice %371 {offsets = [0, 32], sizes = [8, 32], strides = [1, 1]} : vector<8x128xf32> to vector<8x32xf32>
    %375 = vector.extract_strided_slice %372 {offsets = [0, 64], sizes = [8, 32], strides = [1, 1]} : vector<8x128xf32> to vector<8x32xf32>
    %376 = vector.extract_strided_slice %371 {offsets = [0, 96], sizes = [8, 32], strides = [1, 1]} : vector<8x128xf32> to vector<8x32xf32>
    %377 = arith.mulf %374, %342 : vector<8x32xf32>
    %378 = arith.mulf %373, %375 : vector<8x32xf32>
    %379 = arith.addf %377, %378 : vector<8x32xf32>
    %380 = math.tanh %379 : vector<8x32xf32>
    %381 = arith.mulf %376, %380 : vector<8x32xf32>
    %382 = arith.truncf %381 : vector<8x32xf32> to vector<8x32xbf16>
    %cst_181 = arith.constant dense<0.000000e+00> : vector<8x128xf32>
    %383 = tpu.matmul %382, %99, %cst_181 {dimension_numbers = #tpu.dot_dimension_numbers<[1], [0], [0], [1], [0, 0, 1, 1], [], []>} : vector<8x32xbf16>, vector<32x128xbf16>, vector<8x128xf32> -> vector<8x128xf32>
    %384 = vector.broadcast %100 : vector<1x128xf32> to vector<8x128xf32>
    %385 = arith.addf %383, %384 : vector<8x128xf32>
    %cst_182 = arith.constant dense<0xFF800000> : vector<8xf32>
    %386 = vector.multi_reduction <maximumf>, %385, %cst_182 [1] : vector<8x128xf32> to vector<8xf32>
    %387 = vector.shape_cast %386 : vector<8xf32> to vector<8x1xf32>
    %388 = vector.broadcast %387 : vector<8x1xf32> to vector<8x128xf32>
    %389 = arith.subf %385, %388 : vector<8x128xf32>
    %390 = math.exp %389 : vector<8x128xf32>
    %cst_183 = arith.constant dense<0.000000e+00> : vector<8xf32>
    %391 = vector.multi_reduction <add>, %390, %cst_183 [1] : vector<8x128xf32> to vector<8xf32>
    %392 = vector.shape_cast %391 : vector<8xf32> to vector<8x1xf32>
    %393 = math.log %392 : vector<8x1xf32>
    %394 = arith.addf %393, %387 : vector<8x1xf32>
    %395 = vector.broadcast %394 : vector<8x1xf32> to vector<8x128xf32>
    %396 = arith.subf %385, %395 : vector<8x128xf32>
    %c0_184 = arith.constant 0 : index
    %c7_185 = arith.constant 7 : index
    %c0_186 = arith.constant 0 : index
    %397 = vector.load %arg6[%c0_184, %c7_185, %c0_186] : memref<8x8x128xf32, #tpu.memory_space<vmem>>, vector<8x1x128xf32>
    %398 = vector.shape_cast %397 : vector<8x1x128xf32> to vector<8x128xf32>
    %399 = vector.shape_cast %396 : vector<8x128xf32> to vector<8x1x128xf32>
    tpu.vector_store %arg6[%c0_184, %c7_185, %c0_186], %399 {strides = array<i32>} : memref<8x8x128xf32, #tpu.memory_space<vmem>>, vector<8x1x128xf32>,
    return
  }
  func.func @transform_0(%arg0: i32, %arg1: memref<2x8xi32, #tpu.memory_space<smem>>) -> (i32, i32) {
    %c0_i32 = arith.constant 0 : i32
    %c0_i32_0 = arith.constant 0 : i32
    %c0_i32_1 = arith.constant 0 : i32
    return %c0_i32, %c0_i32_0 : i32, i32
  }
  func.func @transform_1(%arg0: i32, %arg1: memref<2x8xi32, #tpu.memory_space<smem>>) -> (i32, i32) {
    %c0_i32 = arith.constant 0 : i32
    %c0_i32_0 = arith.constant 0 : i32
    %c0_i32_1 = arith.constant 0 : i32
    return %c0_i32, %c0_i32_0 : i32, i32
  }
  func.func @transform_2(%arg0: i32, %arg1: memref<2x8xi32, #tpu.memory_space<smem>>) -> (i32, i32) {
    %c0_i32 = arith.constant 0 : i32
    %c0_i32_0 = arith.constant 0 : i32
    %c0_i32_1 = arith.constant 0 : i32
    return %c0_i32, %c0_i32_0 : i32, i32
  }
  func.func @transform_3(%arg0: i32, %arg1: memref<2x8xi32, #tpu.memory_space<smem>>) -> (i32, i32) {
    %c0_i32 = arith.constant 0 : i32
    %c0_i32_0 = arith.constant 0 : i32
    %c0_i32_1 = arith.constant 0 : i32
    return %c0_i32, %c0_i32_0 : i32, i32
  }
  func.func @transform_4(%arg0: i32, %arg1: memref<2x8xi32, #tpu.memory_space<smem>>) -> (i32, i32, i32) {
    %c0_i32 = arith.constant 0 : i32
    %c0_i32_0 = arith.constant 0 : i32
    %c0_i32_1 = arith.constant 0 : i32
    %c0_i32_2 = arith.constant 0 : i32
    return %c0_i32, %c0_i32_0, %c0_i32_1 : i32, i32, i32
  }
}

</mosaic_0001>

<bundles_post_ra>
// kernel: lstm_tagger_forward.1
= control target key start
LH: loop header
LB: loop body
LE: loop exit
PB: predicated region body
PF: predicated region fallthrough
CT: control target
= control target key end

     0   :  { %s2762_s0 = inlined_call_operand.hbm [shape: s32[2,8], index: 0, kind: input, shape index: {}]   ;;  %s2763_s1 = inlined_call_operand.hbm [shape: f32[50,128], index: 1, kind: input, shape index: {}]   ;;  %s2764_s2 = inlined_call_operand.hbm [shape: bf16[32,128], index: 2, kind: input, shape index: {}]   ;;  %s2765_s3 = inlined_call_operand.hbm [shape: bf16[32,128], index: 3, kind: input, shape index: {}]   ;;  %s2766_s4 = inlined_call_operand.vmem [shape: f32[1,128], index: 4, kind: input, shape index: {}]   ;;  %s2767_s5 = inlined_call_operand.vmem [shape: f32[8,8,128], index: 5, kind: output, shape index: {}]  }
   0x1   :  { %s2092_s20 = scalar_lea.hbm %s2762_s0, 32 }
   0x2   :  { %p2093_p0 = scmp.ne.s32.totalorder %s2762_s0, %s2092_s20  ;;  %p2096_p1 = scmp.lt.u32.totalorder %s2092_s20, %s2762_s0 }
   0x4   :  { %p2098_p2 = pnand %p2096_p1, %p2093_p0 }
   0x6   :  { %2101 = shalt.err (!%p2098_p2)  }
   0x7   :  { %s2174_s25 = smov [#allocation4]  }
   0x8   :  { %11 = dma.hbm_to_smem %s2762_s0, 32, %s2174_s25, [#allocation3] }
   0x9   :  { %2168 = dma.done.wait [#allocation3], 32 }
   0xa   :  { %2169 = vsyncadd [#allocation3], 4294967264 }
   0xb   :  { %13 = sfence }
   0xc   :  { %14 = vsyncpa [#allocation6], 0 }
   0xd   :  { %15 = vsyncpa [#allocation8], 0  ;;  %s2175_s28 = smov [#allocation7]   ;;  %s2102_s7 = scalar_lea.hbm %s2764_s2, 256 }
   0xe   :  { %s33_s29 = sshll.u32 %s2175_s28, 4  ;;  %p2103_p3 = scmp.ne.s32.totalorder %s2764_s2, %s2102_s7  ;;  %s34_s29 = int_to_ptr.vmem [resolvable:$true] %s33_s29 }
   0xf   :  { %p2106_p4 = scmp.lt.u32.totalorder %s2102_s7, %s2764_s2 }
  0x11   :  { %p2108_p5 = pnand %p2106_p4, %p2103_p3 }
  0x13   :  { %2111 = shalt.err (!%p2108_p5)
}
  0x14   :  { %s2112_s0 = scalar_lea.vmem %s34_s29, 256  ;;  %p2117_p7 = scmp.lt.s32.totalorder %s34_s29, %s34_s29 }
  0x15   :  { %p2113_p6 = scmp.ne.s32.totalorder %s34_s29, %s2112_s0  ;;  %p2118_p8 = scmp.lt.s32.totalorder %s2112_s0, %s2112_s0 }
  0x17   :  { %p2119_p9 = por %p2118_p8, %p2117_p7 }
  0x19   :  { %p2120_p10 = pnand %p2119_p9, %p2113_p6 }
  0x1b   :  { %2123 = shalt.err (!%p2120_p10)
}
  0x1c   :  { %s2176_s12 = smov 64   ;;  %s2177_s13 = smov 4  }
  0x1d   :  { %39 = dma.hbm_to_vmem [thread:$0]  %s2764_s2, 256, %s34_s29, [#allocation8], %s2176_s12, %s2176_s12, %s2177_s13  }
  0x1e   :  { %s2178_s16 = smov [#allocation5]   ;;  %s2124_s20 = scalar_lea.hbm %s2763_s1, 896 }
  0x1f   :  { %s21_s17 = sshll.u32 %s2178_s16, 4  ;;  %p2125_p11 = scmp.ne.s32.totalorder %s2763_s1, %s2124_s20  ;;  %s22_s17 = int_to_ptr.vmem [resolvable:$true] %s21_s17 }
  0x20   :  { %p2128_p12 = scmp.lt.u32.totalorder %s2124_s20, %s2763_s1 }
  0x22   :  { %p2130_p13 = pnand %p2128_p12, %p2125_p11 }
  0x24   :  { %2133 = shalt.err (!%p2130_p13)
}
  0x25   :  { %s2134_s25 = scalar_lea.vmem %s22_s17, 896  ;;  %p2139_p1 = scmp.lt.s32.totalorder %s22_s17, %s22_s17 }
  0x26   :  { %p2135_p0 = scmp.ne.s32.totalorder %s22_s17, %s2134_s25  ;;  %p2140_p2 = scmp.lt.s32.totalorder %s2134_s25, %s2134_s25 }
  0x28   :  { %p2141_p3 = por %p2140_p2, %p2139_p1 }
  0x2a   :  { %p2142_p4 = pnand %p2141_p3, %p2135_p0 }
  0x2c   :  { %2145 = shalt.err (!%p2142_p4)
}
  0x2d   :  { %s2179_s2 = smov 128   ;;  %s2180_s26 = smov 8  }
  0x2e   :  { %27 = dma.hbm_to_vmem [thread:$0]  %s2763_s1, 896, %s22_s17, [#allocation6], %s2179_s2, %s2179_s2, %s2180_s26  }
  0x2f   :  { %s2181_s29 = smov [#allocation9]   ;;  %s2146_s8 = scalar_lea.hbm %s2765_s3, 256 }
  0x30   :  { %s45_s30 = sshll.u32 %s2181_s29, 4  ;;  %p2147_p5 = scmp.ne.s32.totalorder %s2765_s3, %s2146_s8  ;;  %s46_s30 = int_to_ptr.vmem [resolvable:$true] %s45_s30 }
  0x31   :  { %p2150_p6 = scmp.lt.u32.totalorder %s2146_s8, %s2765_s3 }
  0x33   :  { %p2152_p7 = pnand %p2150_p6, %p2147_p5 }
  0x35   :  { %2155 = shalt.err (!%p2152_p7)
}
  0x36   :  { %s2156_s14 = scalar_lea.vmem %s46_s30, 256  ;;  %p2161_p9 = scmp.lt.s32.totalorder %s46_s30, %s46_s30 }
  0x37   :  { %p2157_p8 = scmp.ne.s32.totalorder %s46_s30, %s2156_s14  ;;  %p2162_p10 = scmp.lt.s32.totalorder %s2156_s14, %s2156_s14 }
  0x39   :  { %p2163_p11 = por %p2162_p10, %p2161_p9 }
  0x3b   :  { %p2164_p12 = pnand %p2163_p11, %p2157_p8 }
  0x3d   :  { %2167 = shalt.err (!%p2164_p12)
}
  0x3e   :  { %51 = dma.hbm_to_vmem [thread:$0]  %s2765_s3, 256, %s46_s30, [#allocation8], %s2176_s12, %s2176_s12, %s2177_s13  }
  0x3f   :  { %2170 = dma.done.wait [#allocation6], 896  }
  0x40   :  { %2171 = vsyncadd [#allocation6], 4294966400 }
  0x41   :  { %2172 = dma.done.wait [#allocation8], 512  }
  0x42   :  { %2173 = vsyncadd [#allocation8], 4294966784  ;;  %v2182_v0 = vmov 0.0   ;;  %vm2183_vm0 = vmmov 0   ;;  %s72_s3 = sld [smem:[#allocation4]]  ;;  %v2285_v1 = vld [vmem:[#allocation7] sm:$0xff]  }
  0x43   :  { %1851 = vmatprep.subr.bf16.mxu0 %v2182_v0  ;;  %64 = vst [vmem:[#allocation2] sm:$0xff] %v2182_v0  ;;  %65 = vst [vmem:[#allocation2 + $0x8] sm:$0xff] %v2182_v0  ;;  %1855 = vmatprep.mubr.msk.bf16.mxu0 %vm2183_vm0, %v2182_v0  ;;  %s1728_s13 = sld [smem:[#allocation4 + $0x80]]  ;;  %v2287_v2 = vld [vmem:[#allocation7 + $0x8] sm:$0xff]   ;;  %v2184_v5 = vmov 0   ;;  %s2185_s18 = smov 32  }
  0x44   :  { %66 = vst [vmem:[#allocation2 + $0x10] sm:$0xff] %v2182_v0  ;;  %67 = vst [vmem:[#allocation2 + $0x18] sm:$0xff] %v2182_v0  ;;  %1859 = vmatprep.subr.bf16.mxu1 %v2182_v0  ;;  %1863 = vmatprep.mubr.msk.bf16.mxu1 %vm2183_vm0, %v2182_v0  ;;  %v2301_v22 = vld [vmem:[#allocation9] sm:$0xff]   ;;  %v2304_v23 = vld [vmem:[#allocation9 + $0x8] sm:$0xff]   ;;  %vm165_vm1 = vcmask 261120   ;;  %s1729_s19 = sld [smem:[#allocation4 + $0x1]] }
  0x45   :  { %68 = vst [vmem:[#allocation2 + $0x20] sm:$0xff] %v2182_v0  ;;  %69 = vst [vmem:[#allocation2 + $0x28] sm:$0xff] %v2182_v0  ;;  %1852 = vmatpush3.bf16.msra.mxu0 %v2285_v1  ;;  %1860 = vmatpush3.bf16.msra.mxu1 %v2301_v22  ;;  %s1730_s20 = sld [smem:[#allocation4 + $0x81]]  ;;  %s1731_s23 = sld [smem:[#allocation4 + $0x2]] }
  0x46   :  { %70 = vst [vmem:[#allocation2 + $0x30] sm:$0xff] %v2182_v0  ;;  %71 = vst [vmem:[#allocation2 + $0x38] sm:$0xff] %v2182_v0  ;;  %1853 = vmatprep.subr.bf16.mxu0 %v2182_v0  ;;  %1861 = vmatprep.subr.bf16.mxu1 %v2182_v0  ;;  %s1732_s24 = sld [smem:[#allocation4 + $0x82]]  ;;  %s1733_s26 = sld [smem:[#allocation4 + $0x3]] }
  0x47   :  { %s1734_s27 = sld [smem:[#allocation4 + $0x83]]  ;;  %s1735_s30 = sld [smem:[#allocation4 + $0x4]] }
  0x48   :  { %s73_s16 = scalar_lea.vmem [#allocation5], %s72_s3  ;;  %s1736_s6 = sld [smem:[#allocation4 + $0x84]] }
  0x49   :  { %v74_v3 = vld [vmem:[%s73_s16] sm:$0x1]  ;;  %s77_s17 = scalar_lea.vmem [#allocation5], %s1728_s13  ;;  %1854 = vmatpush3.bf16.msra.mxu0 %v2287_v2  ;;  %1862 = vmatpush3.bf16.msra.mxu1 %v2304_v23  ;;  %s1737_s9 = sld [smem:[#allocation4 + $0x5]] }
  0x4a   :  { %v78_v4 = vld [vmem:[%s77_s17] sm:$0x1]  ;;  %75 = vst [vmem:[#allocation2] sm:$0x1] %v74_v3  ;;  %1867 = vmatprep.subr.bf16.mxu0 %v2182_v0  ;;  %1875 = vmatprep.subr.bf16.mxu1 %v2182_v0  ;;  %s81_s21 = scalar_lea.vmem [#allocation5], %s1729_s19  ;;  %s1738_s10 = sld [smem:[#allocation4 + $0x85]] }
  0x4b   :  { %79 = vst [vmem:[#allocation2 + $0x1] sm:$0x1] %v78_v4  ;;  %v82_v29 = vld [vmem:[%s81_s21] sm:$0x1]  ;;  %s86_s22 = scalar_lea.vmem [#allocation5], %s1730_s20  ;;  %s90_s25 = scalar_lea.vmem [#allocation5], %s1731_s23 }
  0x4c   :  { %1856 = vmatmul.mubr.bf16.vlgmr.msra.gmra.mrb[0].mxu0 %v2184_v5  ;;  %v87_v30 = vld [vmem:[%s86_s22] sm:$0x1]  ;;  %84 = vst [vmem:[#allocation2 + $0x8] sm:$0x1] %v82_v29  ;;  %s95_s2 = scalar_lea.vmem [#allocation5], %s1732_s24  ;;  %s99_s28 = scalar_lea.vmem [#allocation5], %s1733_s26 }
  0x4d   :  { %1868 = vmatpush3.bf16.msra.mxu0 %v2285_v1  ;;  %1871 = vmatprep.mubr.msk.bf16.mxu0 %vm2183_vm0, %v2182_v0  ;;  %88 = vst [vmem:[#allocation2 + $0x9] sm:$0x1] %v87_v30  ;;  %v91_v56 = vld [vmem:[%s90_s25] sm:$0x1]  ;;  %s104_s29 = scalar_lea.vmem [#allocation5], %s1734_s27  ;;  %s108_s7 = scalar_lea.vmem [#allocation5], %s1735_s30 }
  0x4e   :  { %1869 = vmatprep.subr.bf16.mxu0 %v2182_v0  ;;  %v96_v57 = vld [vmem:[%s95_s2] sm:$0x1]  ;;  %93 = vst [vmem:[#allocation2 + $0x10] sm:$0x1] %v91_v56  ;;  %s113_s8 = scalar_lea.vmem [#allocation5], %s1736_s6  ;;  %s1739_s14 = sld [smem:[#allocation4 + $0x6]] }
  0x4f   :  { %97 = vst [vmem:[#allocation2 + $0x11] sm:$0x1] %v96_v57  ;;  %s117_s11 = scalar_lea.vmem [#allocation5], %s1737_s9  ;;  %s1740_s1 = sld [smem:[#allocation4 + $0x86]] }
  0x50   :  { %s122_s0 = scalar_lea.vmem [#allocation5], %s1738_s10  ;;  %s1741_s13 = sld [smem:[#allocation4 + $0x7]] }
  0x51   :  { %1870 = vmatpush3.bf16.msra.mxu0 %v2287_v2  ;;  %s1742_s16 = sld [smem:[#allocation4 + $0x87]] }
  0x52   :  { %1883 = vmatprep.subr.bf16.mxu0 %v2182_v0  ;;  %v152_v6 = vld [vmem:[#allocation2] sm:$0xff] }
  0x54   :  { %v376_v31 = vld [vmem:[#allocation2 + $0x8] sm:$0xff]  ;;  %s126_s15 = scalar_lea.vmem [#allocation5], %s1739_s14 }
  0x55   :  { %s131_s3 = scalar_lea.vmem [#allocation5], %s1740_s1 }
  0x56   :  { %v566_v58 = vld [vmem:[#allocation2 + $0x10] sm:$0xff]  ;;  %s135_s17 = scalar_lea.vmem [#allocation5], %s1741_s13 }
  0x57   :  { %s140_s19 = scalar_lea.vmem [#allocation5], %s1742_s16 }
 0x11f   :  { %v203_v7 = vpop.f32.mrb[0].mxu0 }
 0x120   :  { %v209_v8 = vadd.f32 %v203_v7, %v152_v6  ;;  %v1857_v9 = vpop.f32.mrb[1].mxu0 }
 0x121   :  { %v206_v10 = vpop.f32.mrb[2].mxu0 }
 0x122   :  { %v1858_v11 = vpop.f32.mrb[3].mxu0  ;;  %1996 = vtanh.f32 %v209_v8  ;;  %v1745_v13 = vmul.f32 -1.442695, %v209_v8 }
 0x124   :  { %1998 = vpow2.f32 %v1745_v13 }
 0x12c   :  { %v1997_v12 = vpop.eup %1996 }
 0x12d   :  { %219 = vrot.lane.b32.xlu0 %v1997_v12, %s2176_s12 }
 0x12e   :  { %v1999_v14 = vpop.eup %1998 }
 0x12f   :  { %v213_v15 = vadd.f32 1.0, %v1999_v14 }
 0x131   :  { %2000 = vrcp.f32 %v213_v15 }
 0x13b   :  { %v2001_v16 = vpop.eup %2000 }
 0x13c   :  { %v217_v19 = vmul.f32 0.0, %v2001_v16 }
 0x19f   :  { %v220_v17 = vpop.permute.xlu0 %219 }
 0x1a0   :  { %v222_v18 = vmul.f32 %v2001_v16, %v220_v17 }
 0x1a2   :  { %224 = vrot.lane.b32.xlu0 %v222_v18, %s2185_s18 }
 0x214   :  { %v225_v20 = vpop.permute.xlu0 %224 }
 0x215   :  { %v227_v21 = vadd.f32 %v225_v20, %v217_v19 }
 0x217   :  { %2002 = vtanh.f32 %v227_v21 }
 0x221   :  { %v2003_v24 = vpop.eup %2002 }
 0x222   :  { %230 = vrot.lane.b32.xlu1 %v2003_v24, %s2176_s12  ;;  %v100_v24 = vld [vmem:[%s99_s28] sm:$0x1] }
 0x223   :  { %102 = vst [vmem:[#allocation2 + $0x18] sm:$0x1] %v100_v24 }
 0x294   :  { %v231_v25 = vpop.permute.xlu1 %230 }
 0x295   :  { %v233_v26 = vmul.f32 %v2001_v16, %v231_v25  ;;  %v105_v25 = vld [vmem:[%s104_s29] sm:$0x1] }
 0x296   :  { %106 = vst [vmem:[#allocation2 + $0x19] sm:$0x1] %v105_v25 }
 0x297   :  { %v234_v27 = vpack.c.bf16 %v233_v26, %v233_v26 }
 0x299   :  { %242 = vrot.lane.b32.xlu1 %v234_v27, %s2185_s18 }
 0x29d   :  { %v756_v26 = vld [vmem:[#allocation2 + $0x18] sm:$0xff] }
 0x30b   :  { %v243_v28 = vpop.permute.xlu1 %242 }
 0x30c   :  { %1864 = vmatmul.mubr.msk.bf16.vlgmr.msra.gmra.mrb[0].mxu1 %vm165_vm1, %v243_v28  ;;  %1872 = vmatmul.mubr.msk.bf16.vlgmr.msra.gmra.mrb[4].mxu0 %vm165_vm1, %v243_v28 }
 0x30d   :  { %1884 = vmatpush3.bf16.msra.mxu0 %v2285_v1  ;;  %1876 = vmatpush3.bf16.msra.mxu1 %v2301_v22 }
 0x30e   :  { %1885 = vmatprep.subr.bf16.mxu0 %v2182_v0  ;;  %1877 = vmatprep.subr.bf16.mxu1 %v2182_v0 }
 0x30f   :  { %1887 = vmatprep.mubr.msk.bf16.mxu0 %vm2183_vm0, %v2182_v0  ;;  %1879 = vmatprep.mubr.msk.bf16.mxu1 %vm2183_vm0, %v2182_v0 }
 0x311   :  { %1886 = vmatpush3.bf16.msra.mxu0 %v2287_v2  ;;  %1878 = vmatpush3.bf16.msra.mxu1 %v2304_v23 }
 0x312   :  { %1899 = vmatprep.subr.bf16.mxu0 %v2182_v0  ;;  %1891 = vmatprep.subr.bf16.mxu1 %v2182_v0 }
 0x3df   :  { %v2325_v32 = vpop.f32.mrb[0].mxu1  ;;  %v411_v33 = vpop.f32.mrb[4].mxu0 }
 0x3e0   :  { %v417_v34 = vadd.f32 %v411_v33, %v376_v31  ;;  %v1865_v35 = vpop.f32.mrb[1].mxu1  ;;  %v1873_v36 = vpop.f32.mrb[5].mxu0 }
 0x3e1   :  { %v296_v37 = vpop.f32.mrb[2].mxu1  ;;  %v414_v38 = vpop.f32.mrb[6].mxu0 }
 0x3e2   :  { %2004 = vtanh.f32 %v417_v34  ;;  %v1866_v39 = vpop.f32.mrb[3].mxu1  ;;  %v1874_v40 = vpop.f32.mrb[7].mxu0  ;;  %v1755_v42 = vmul.f32 -1.442695, %v417_v34 }
 0x3e4   :  { %2006 = vpow2.f32 %v1755_v42 }
 0x3ec   :  { %v2005_v41 = vpop.eup %2004 }
 0x3ed   :  { %427 = vrot.lane.b32.xlu0 %v2005_v41, %s2176_s12 }
 0x3ee   :  { %v2007_v43 = vpop.eup %2006 }
 0x3ef   :  { %v421_v44 = vadd.f32 1.0, %v2007_v43 }
 0x3f1   :  { %2008 = vrcp.f32 %v421_v44 }
 0x3fb   :  { %v2009_v45 = vpop.eup %2008 }
 0x3fc   :  { %v425_v48 = vmul.f32 %v2009_v45, %v227_v21 }
 0x45f   :  { %v428_v46 = vpop.permute.xlu0 %427 }
 0x460   :  { %v430_v47 = vmul.f32 %v2009_v45, %v428_v46 }
 0x462   :  { %432 = vrot.lane.b32.xlu1 %v430_v47, %s2185_s18 }
 0x4d4   :  { %v433_v49 = vpop.permute.xlu1 %432 }
 0x4d5   :  { %v435_v50 = vadd.f32 %v433_v49, %v425_v48 }
 0x4d7   :  { %2010 = vtanh.f32 %v435_v50 }
 0x4e1   :  { %v2011_v51 = vpop.eup %2010 }
 0x4e2   :  { %438 = vrot.lane.b32.xlu0 %v2011_v51, %s2176_s12 }
 0x554   :  { %v439_v52 = vpop.permute.xlu0 %438 }
 0x555   :  { %v441_v53 = vmul.f32 %v2009_v45, %v439_v52  ;;  %v109_v52 = vld [vmem:[%s108_s7] sm:$0x1] }
 0x556   :  { %111 = vst [vmem:[#allocation2 + $0x20] sm:$0x1] %v109_v52 }
 0x557   :  { %v442_v54 = vpack.c.bf16 %v441_v53, %v441_v53  ;;  %v114_v53 = vld [vmem:[%s113_s8] sm:$0x1] }
 0x558   :  { %115 = vst [vmem:[#allocation2 + $0x21] sm:$0x1] %v114_v53 }
 0x559   :  { %444 = vrot.lane.b32.xlu1 %v442_v54, %s2185_s18 }
 0x55f   :  { %v946_v54 = vld [vmem:[#allocation2 + $0x20] sm:$0xff] }
 0x5cb   :  { %v445_v55 = vpop.permute.xlu1 %444 }
 0x5cc   :  { %1880 = vmatmul.mubr.msk.bf16.vlgmr.msra.gmra.mrb[4].mxu1 %vm165_vm1, %v445_v55  ;;  %1888 = vmatmul.mubr.msk.bf16.vlgmr.msra.gmra.mrb[8].mxu0 %vm165_vm1, %v445_v55 }
 0x5cd   :  { %1900 = vmatpush3.bf16.msra.mxu0 %v2285_v1  ;;  %1892 = vmatpush3.bf16.msra.mxu1 %v2301_v22 }
 0x5ce   :  { %1901 = vmatprep.subr.bf16.mxu0 %v2182_v0  ;;  %1893 = vmatprep.subr.bf16.mxu1 %v2182_v0 }
 0x5cf   :  { %1903 = vmatprep.mubr.msk.bf16.mxu0 %vm2183_vm0, %v2182_v0  ;;  %1895 = vmatprep.mubr.msk.bf16.mxu1 %vm2183_vm0, %v2182_v0 }
 0x5d1   :  { %1902 = vmatpush3.bf16.msra.mxu0 %v2287_v2  ;;  %1894 = vmatpush3.bf16.msra.mxu1 %v2304_v23 }
 0x5d2   :  { %1915 = vmatprep.subr.bf16.mxu0 %v2182_v0  ;;  %1907 = vmatprep.subr.bf16.mxu1 %v2182_v0 }
 0x69f   :  { %v2345_v59 = vpop.f32.mrb[4].mxu1  ;;  %v601_v60 = vpop.f32.mrb[8].mxu0 }
 0x6a0   :  { %v607_v61 = vadd.f32 %v601_v60, %v566_v58  ;;  %v1881_v62 = vpop.f32.mrb[5].mxu1  ;;  %v1889_v63 = vpop.f32.mrb[9].mxu0 }
 0x6a1   :  { %v486_v3 = vpop.f32.mrb[6].mxu1  ;;  %v604_v4 = vpop.f32.mrb[10].mxu0 }
 0x6a2   :  { %2012 = vtanh.f32 %v607_v61  ;;  %v1882_v5 = vpop.f32.mrb[7].mxu1  ;;  %v1890_v6 = vpop.f32.mrb[11].mxu0  ;;  %v1762_v8 = vmul.f32 -1.442695, %v607_v61 }
 0x6a4   :  { %2014 = vpow2.f32 %v1762_v8 }
 0x6ac   :  { %v2013_v7 = vpop.eup %2012 }
 0x6ad   :  { %617 = vrot.lane.b32.xlu0 %v2013_v7, %s2176_s12 }
 0x6ae   :  { %v2015_v9 = vpop.eup %2014 }
 0x6af   :  { %v611_v10 = vadd.f32 1.0, %v2015_v9 }
 0x6b1   :  { %2016 = vrcp.f32 %v611_v10 }
 0x6bb   :  { %v2017_v11 = vpop.eup %2016 }
 0x6bc   :  { %v615_v14 = vmul.f32 %v2017_v11, %v435_v50 }
 0x71f   :  { %v618_v12 = vpop.permute.xlu0 %617 }
 0x720   :  { %v620_v13 = vmul.f32 %v2017_v11, %v618_v12 }
 0x722   :  { %622 = vrot.lane.b32.xlu1 %v620_v13, %s2185_s18 }
 0x794   :  { %v623_v15 = vpop.permute.xlu1 %622 }
 0x795   :  { %v625_v16 = vadd.f32 %v623_v15, %v615_v14 }
 0x797   :  { %2018 = vtanh.f32 %v625_v16 }
 0x7a1   :  { %v2019_v17 = vpop.eup %2018 }
 0x7a2   :  { %628 = vrot.lane.b32.xlu0 %v2019_v17, %s2176_s12 }
 0x814   :  { %v629_v18 = vpop.permute.xlu0 %628 }
 0x815   :  { %v631_v19 = vmul.f32 %v2017_v11, %v629_v18 }
 0x817   :  { %v632_v20 = vpack.c.bf16 %v631_v19, %v631_v19  ;;  %v118_v19 = vld [vmem:[%s117_s11] sm:$0x1] }
 0x818   :  { %120 = vst [vmem:[#allocation2 + $0x28] sm:$0x1] %v118_v19 }
 0x819   :  { %634 = vrot.lane.b32.xlu1 %v632_v20, %s2185_s18  ;;  %v123_v20 = vld [vmem:[%s122_s0] sm:$0x1] }
 0x81a   :  { %124 = vst [vmem:[#allocation2 + $0x29] sm:$0x1] %v123_v20 }
 0x88b   :  { %v635_v21 = vpop.permute.xlu1 %634 }
 0x88c   :  { %1896 = vmatmul.mubr.msk.bf16.vlgmr.msra.gmra.mrb[8].mxu1 %vm165_vm1, %v635_v21  ;;  %1904 = vmatmul.mubr.msk.bf16.vlgmr.msra.gmra.mrb[12].mxu0 %vm165_vm1, %v635_v21  ;;  %v1136_v21 = vld [vmem:[#allocation2 + $0x28] sm:$0xff] }
 0x88d   :  { %1916 = vmatpush3.bf16.msra.mxu0 %v2285_v1  ;;  %1908 = vmatpush3.bf16.msra.mxu1 %v2301_v22 }
 0x88e   :  { %1917 = vmatprep.subr.bf16.mxu0 %v2182_v0  ;;  %1909 = vmatprep.subr.bf16.mxu1 %v2182_v0 }
 0x88f   :  { %1919 = vmatprep.mubr.msk.bf16.mxu0 %vm2183_vm0, %v2182_v0  ;;  %1911 = vmatprep.mubr.msk.bf16.mxu1 %vm2183_vm0, %v2182_v0 }
 0x891   :  { %1918 = vmatpush3.bf16.msra.mxu0 %v2287_v2  ;;  %1910 = vmatpush3.bf16.msra.mxu1 %v2304_v23 }
 0x892   :  { %1931 = vmatprep.subr.bf16.mxu0 %v2182_v0  ;;  %1923 = vmatprep.subr.bf16.mxu1 %v2182_v0 }
 0x95f   :  { %v2365_v27 = vpop.f32.mrb[8].mxu1  ;;  %v791_v28 = vpop.f32.mrb[12].mxu0 }
 0x960   :  { %v797_v29 = vadd.f32 %v791_v28, %v756_v26  ;;  %v1897_v30 = vpop.f32.mrb[9].mxu1  ;;  %v1905_v31 = vpop.f32.mrb[13].mxu0 }
 0x961   :  { %v676_v33 = vpop.f32.mrb[10].mxu1  ;;  %v794_v34 = vpop.f32.mrb[14].mxu0 }
 0x962   :  { %2020 = vtanh.f32 %v797_v29  ;;  %v1898_v35 = vpop.f32.mrb[11].mxu1  ;;  %v1906_v36 = vpop.f32.mrb[15].mxu0  ;;  %v1769_v38 = vmul.f32 -1.442695, %v797_v29 }
 0x964   :  { %2022 = vpow2.f32 %v1769_v38 }
 0x96c   :  { %v2021_v37 = vpop.eup %2020 }
 0x96d   :  { %807 = vrot.lane.b32.xlu0 %v2021_v37, %s2176_s12 }
 0x96e   :  { %v2023_v39 = vpop.eup %2022 }
 0x96f   :  { %v801_v40 = vadd.f32 1.0, %v2023_v39 }
 0x971   :  { %2024 = vrcp.f32 %v801_v40 }
 0x97b   :  { %v2025_v41 = vpop.eup %2024 }
 0x97c   :  { %v805_v44 = vmul.f32 %v2025_v41, %v625_v16 }
 0x9df   :  { %v808_v42 = vpop.permute.xlu0 %807 }
 0x9e0   :  { %v810_v43 = vmul.f32 %v2025_v41, %v808_v42 }
 0x9e2   :  { %812 = vrot.lane.b32.xlu1 %v810_v43, %s2185_s18 }
 0xa54   :  { %v813_v45 = vpop.permute.xlu1 %812 }
 0xa55   :  { %v815_v46 = vadd.f32 %v813_v45, %v805_v44 }
 0xa57   :  { %2026 = vtanh.f32 %v815_v46 }
 0xa61   :  { %v2027_v47 = vpop.eup %2026 }
 0xa62   :  { %818 = vrot.lane.b32.xlu0 %v2027_v47, %s2176_s12 }
 0xad4   :  { %v819_v48 = vpop.permute.xlu0 %818 }
 0xad5   :  { %v821_v49 = vmul.f32 %v2025_v41, %v819_v48 }
 0xad7   :  { %v822_v50 = vpack.c.bf16 %v821_v49, %v821_v49 }
 0xad9   :  { %824 = vrot.lane.b32.xlu1 %v822_v50, %s2185_s18  ;;  %v132_v50 = vld [vmem:[%s131_s3] sm:$0x1] }
 0xada   :  { %133 = vst [vmem:[#allocation2 + $0x31] sm:$0x1] %v132_v50 }
 0xb4b   :  { %v825_v51 = vpop.permute.xlu1 %824 }
 0xb4c   :  { %1912 = vmatmul.mubr.msk.bf16.vlgmr.msra.gmra.mrb[12].mxu1 %vm165_vm1, %v825_v51  ;;  %1920 = vmatmul.mubr.msk.bf16.vlgmr.msra.gmra.mrb[16].mxu0 %vm165_vm1, %v825_v51 }
 0xb4d   :  { %1932 = vmatpush3.bf16.msra.mxu0 %v2285_v1  ;;  %1924 = vmatpush3.bf16.msra.mxu1 %v2301_v22 }
 0xb4e   :  { %1933 = vmatprep.subr.bf16.mxu0 %v2182_v0  ;;  %1925 = vmatprep.subr.bf16.mxu1 %v2182_v0 }
 0xb4f   :  { %1935 = vmatprep.mubr.msk.bf16.mxu0 %vm2183_vm0, %v2182_v0  ;;  %1927 = vmatprep.mubr.msk.bf16.mxu1 %vm2183_vm0, %v2182_v0 }
 0xb51   :  { %1934 = vmatpush3.bf16.msra.mxu0 %v2287_v2  ;;  %1926 = vmatpush3.bf16.msra.mxu1 %v2304_v23 }
 0xb52   :  { %1947 = vmatprep.subr.bf16.mxu0 %v2182_v0  ;;  %1939 = vmatprep.subr.bf16.mxu1 %v2182_v0 }
 0xc1f   :  { %v2385_v55 = vpop.f32.mrb[12].mxu1  ;;  %v981_v56 = vpop.f32.mrb[16].mxu0 }
 0xc20   :  { %v987_v57 = vadd.f32 %v981_v56, %v946_v54  ;;  %v1913_v58 = vpop.f32.mrb[13].mxu1  ;;  %v1921_v60 = vpop.f32.mrb[17].mxu0 }
 0xc21   :  { %v866_v61 = vpop.f32.mrb[14].mxu1  ;;  %v984_v62 = vpop.f32.mrb[18].mxu0 }
 0xc22   :  { %2028 = vtanh.f32 %v987_v57  ;;  %v1914_v63 = vpop.f32.mrb[15].mxu1  ;;  %v1922_v3 = vpop.f32.mrb[19].mxu0  ;;  %v1776_v5 = vmul.f32 -1.442695, %v987_v57 }
 0xc24   :  { %2030 = vpow2.f32 %v1776_v5 }
 0xc2c   :  { %v2029_v4 = vpop.eup %2028 }
 0xc2d   :  { %997 = vrot.lane.b32.xlu0 %v2029_v4, %s2176_s12 }
 0xc2e   :  { %v2031_v6 = vpop.eup %2030 }
 0xc2f   :  { %v991_v7 = vadd.f32 1.0, %v2031_v6 }
 0xc31   :  { %2032 = vrcp.f32 %v991_v7 }
 0xc3b   :  { %v2033_v8 = vpop.eup %2032 }
 0xc3c   :  { %v995_v11 = vmul.f32 %v2033_v8, %v815_v46 }
 0xc9f   :  { %v998_v9 = vpop.permute.xlu0 %997 }
 0xca0   :  { %v1000_v10 = vmul.f32 %v2033_v8, %v998_v9 }
 0xca2   :  { %1002 = vrot.lane.b32.xlu1 %v1000_v10, %s2185_s18 }
 0xd14   :  { %v1003_v12 = vpop.permute.xlu1 %1002 }
 0xd15   :  { %v1005_v13 = vadd.f32 %v1003_v12, %v995_v11 }
 0xd17   :  { %2034 = vtanh.f32 %v1005_v13 }
 0xd21   :  { %v2035_v14 = vpop.eup %2034 }
 0xd22   :  { %1008 = vrot.lane.b32.xlu0 %v2035_v14, %s2176_s12 }
 0xd94   :  { %v1009_v15 = vpop.permute.xlu0 %1008 }
 0xd95   :  { %v1011_v16 = vmul.f32 %v2033_v8, %v1009_v15 }
 0xd97   :  { %v1012_v17 = vpack.c.bf16 %v1011_v16, %v1011_v16  ;;  %v136_v16 = vld [vmem:[%s135_s17] sm:$0x1] }
 0xd98   :  { %138 = vst [vmem:[#allocation2 + $0x38] sm:$0x1] %v136_v16 }
 0xd99   :  { %1014 = vrot.lane.b32.xlu1 %v1012_v17, %s2185_s18  ;;  %v141_v17 = vld [vmem:[%s140_s19] sm:$0x1] }
 0xd9a   :  { %142 = vst [vmem:[#allocation2 + $0x39] sm:$0x1] %v141_v17 }
 0xe0b   :  { %v1015_v18 = vpop.permute.xlu1 %1014 }
 0xe0c   :  { %1928 = vmatmul.mubr.msk.bf16.vlgmr.msra.gmra.mrb[16].mxu1 %vm165_vm1, %v1015_v18  ;;  %1936 = vmatmul.mubr.msk.bf16.vlgmr.msra.gmra.mrb[20].mxu0 %vm165_vm1, %v1015_v18  ;;  %v1516_v18 = vld [vmem:[#allocation2 + $0x38] sm:$0xff] }
 0xe0d   :  { %1948 = vmatpush3.bf16.msra.mxu0 %v2285_v1  ;;  %1940 = vmatpush3.bf16.msra.mxu1 %v2301_v22 }
 0xe0e   :  { %1949 = vmatprep.subr.bf16.mxu0 %v2182_v0  ;;  %1941 = vmatprep.subr.bf16.mxu1 %v2182_v0 }
 0xe0f   :  { %1951 = vmatprep.mubr.msk.bf16.mxu0 %vm2183_vm0, %v2182_v0  ;;  %1943 = vmatprep.mubr.msk.bf16.mxu1 %vm2183_vm0, %v2182_v0 }
 0xe11   :  { %1950 = vmatpush3.bf16.msra.mxu0 %v2287_v2  ;;  %1942 = vmatpush3.bf16.msra.mxu1 %v2304_v23 }
 0xe12   :  { %1963 = vmatprep.subr.bf16.mxu0 %v2182_v0  ;;  %1955 = vmatprep.subr.bf16.mxu1 %v2182_v0 }
 0xedf   :  { %v2405_v24 = vpop.f32.mrb[16].mxu1  ;;  %v1171_v25 = vpop.f32.mrb[20].mxu0 }
 0xee0   :  { %v1177_v26 = vadd.f32 %v1171_v25, %v1136_v21  ;;  %v1929_v28 = vpop.f32.mrb[17].mxu1  ;;  %v1937_v29 = vpop.f32.mrb[21].mxu0 }
 0xee1   :  { %v1056_v30 = vpop.f32.mrb[18].mxu1  ;;  %v1174_v31 = vpop.f32.mrb[22].mxu0 }
 0xee2   :  { %2036 = vtanh.f32 %v1177_v26  ;;  %v1930_v33 = vpop.f32.mrb[19].mxu1  ;;  %v1938_v34 = vpop.f32.mrb[23].mxu0  ;;  %v1783_v36 = vmul.f32 -1.442695, %v1177_v26 }
 0xee4   :  { %2038 = vpow2.f32 %v1783_v36 }
 0xeec   :  { %v2037_v35 = vpop.eup %2036 }
 0xeed   :  { %1187 = vrot.lane.b32.xlu0 %v2037_v35, %s2176_s12 }
 0xeee   :  { %v2039_v37 = vpop.eup %2038 }
 0xeef   :  { %v1181_v38 = vadd.f32 1.0, %v2039_v37 }
 0xef1   :  { %2040 = vrcp.f32 %v1181_v38 }
 0xefb   :  { %v2041_v39 = vpop.eup %2040 }
 0xefc   :  { %v1185_v42 = vmul.f32 %v2041_v39, %v1005_v13 }
 0xf5f   :  { %v1188_v40 = vpop.permute.xlu0 %1187 }
 0xf60   :  { %v1190_v41 = vmul.f32 %v2041_v39, %v1188_v40 }
 0xf62   :  { %1192 = vrot.lane.b32.xlu1 %v1190_v41, %s2185_s18  ;;  %v2443_v41 = vld [vmem:[%s2766_s4] ss:$0 sm:$0xff] }
 0xfd4   :  { %v1193_v43 = vpop.permute.xlu1 %1192 }
 0xfd5   :  { %v1195_v44 = vadd.f32 %v1193_v43, %v1185_v42  ;;  %v294_v42 = vadd.f32 %v2443_v41, %v2325_v32  ;;  %v2449_v43 = vadd.f32 %v2443_v41, %v2345_v59  ;;  %v2456_v59 = vadd.f32 %v2443_v41, %v2365_v27 }
 0xfd7   :  { %2042 = vtanh.f32 %v1195_v44 }
 0xfe1   :  { %v2043_v45 = vpop.eup %2042 }
 0xfe2   :  { %1198 = vrot.lane.b32.xlu0 %v2043_v45, %s2176_s12 }
0x1054   :  { %v1199_v46 = vpop.permute.xlu0 %1198 }
0x1055   :  { %v1201_v47 = vmul.f32 %v2041_v39, %v1199_v46 }
0x1057   :  { %v1202_v48 = vpack.c.bf16 %v1201_v47, %v1201_v47 }
0x1059   :  { %1204 = vrot.lane.b32.xlu1 %v1202_v48, %s2185_s18 }
0x10cb   :  { %v1205_v49 = vpop.permute.xlu1 %1204 }
0x10cc   :  { %1944 = vmatmul.mubr.msk.bf16.vlgmr.msra.gmra.mrb[20].mxu1 %vm165_vm1, %v1205_v49  ;;  %1952 = vmatmul.mubr.msk.bf16.vlgmr.msra.gmra.mrb[24].mxu0 %vm165_vm1, %v1205_v49 }
0x10cd   :  { %1964 = vmatpush3.bf16.msra.mxu0 %v2285_v1  ;;  %1956 = vmatpush3.bf16.msra.mxu1 %v2301_v22  ;;  %v127_v1 = vld [vmem:[%s126_s15] sm:$0x1] }
0x10ce   :  { %1965 = vmatprep.subr.bf16.mxu0 %v2182_v0  ;;  %1957 = vmatprep.subr.bf16.mxu1 %v2182_v0  ;;  %129 = vst [vmem:[#allocation2 + $0x30] sm:$0x1] %v127_v1 }
0x10cf   :  { %1967 = vmatprep.mubr.msk.bf16.mxu0 %vm2183_vm0, %v2182_v0  ;;  %1959 = vmatprep.mubr.msk.bf16.mxu1 %vm2183_vm0, %v2182_v0 }
0x10d1   :  { %1966 = vmatpush3.bf16.msra.mxu0 %v2287_v2  ;;  %1958 = vmatpush3.bf16.msra.mxu1 %v2304_v23 }
0x10d2   :  { %1971 = vmatprep.subr.bf16.mxu1 %v2182_v0 }
0x10d5   :  { %v1326_v51 = vld [vmem:[#allocation2 + $0x30] sm:$0xff] }
0x119f   :  { %v2424_v52 = vpop.f32.mrb[20].mxu1  ;;  %v1361_v53 = vpop.f32.mrb[24].mxu0 }
0x11a0   :  { %v1367_v54 = vadd.f32 %v1361_v53, %v1326_v51  ;;  %v1945_v56 = vpop.f32.mrb[21].mxu1  ;;  %v1953_v57 = vpop.f32.mrb[25].mxu0  ;;  %v2471_v27 = vadd.f32 %v2443_v41, %v2424_v52 }
0x11a1   :  { %v1246_v2 = vpop.f32.mrb[22].mxu1  ;;  %v1364_v58 = vpop.f32.mrb[26].mxu0  ;;  %v2465_v56 = vadd.f32 %v2443_v41, %v2405_v24 }
0x11a2   :  { %2044 = vtanh.f32 %v1367_v54  ;;  %v1946_v60 = vpop.f32.mrb[23].mxu1  ;;  %v1954_v61 = vpop.f32.mrb[27].mxu0  ;;  %v1790_v63 = vmul.f32 -1.442695, %v1367_v54  ;;  %v2461_v54 = vadd.f32 %v2443_v41, %v2385_v55 }
0x11a3   :  { %v2186_v60 = vmov 1966171168  }
0x11a4   :  { %2046 = vpow2.f32 %v1790_v63  ;;  %v313_v61 = vunpack.c.l.s4 %v2186_v60 }
0x11ac   :  { %v2045_v62 = vpop.eup %2044 }
0x11ad   :  { %1377 = vrot.lane.b32.xlu0 %v2045_v62, %s2176_s12  ;;  %v315_v62 = vlaneseq }
0x11ae   :  { %v2047_v3 = vpop.eup %2046 }
0x11af   :  { %v1371_v4 = vadd.f32 1.0, %v2047_v3 }
0x11b1   :  { %2048 = vrcp.f32 %v1371_v4 }
0x11bb   :  { %v2049_v5 = vpop.eup %2048 }
0x11bc   :  { %v1375_v8 = vmul.f32 %v2049_v5, %v1195_v44 }
0x121f   :  { %v1378_v6 = vpop.permute.xlu0 %1377 }
0x1220   :  { %v1380_v7 = vmul.f32 %v2049_v5, %v1378_v6  ;;  %v316_v6 = vshrl.u32 %v315_v62, 7 }
0x1222   :  { %1382 = vrot.lane.b32.xlu1 %v1380_v7, %s2185_s18 }
0x1294   :  { %v1383_v9 = vpop.permute.xlu1 %1382 }
0x1295   :  { %v1385_v10 = vadd.f32 %v1383_v9, %v1375_v8 }
0x1297   :  { %2050 = vtanh.f32 %v1385_v10 }
0x12a1   :  { %v2051_v11 = vpop.eup %2050 }
0x12a2   :  { %1388 = vrot.lane.b32.xlu0 %v2051_v11, %s2176_s12 }
0x1314   :  { %v1389_v12 = vpop.permute.xlu0 %1388 }
0x1315   :  { %v1391_v13 = vmul.f32 %v2049_v5, %v1389_v12  ;;  %v314_v5 = vunpack.c.0.s8 %v313_v61 }
0x1317   :  { %v1392_v14 = vpack.c.bf16 %v1391_v13, %v1391_v13  ;;  %v2491_v12 = vsub.s32 %v314_v5, %v316_v6 }
0x1319   :  { %1394 = vrot.lane.b32.xlu1 %v1392_v14, %s2185_s18 }
0x138b   :  { %v1395_v15 = vpop.permute.xlu1 %1394 }
0x138c   :  { %1960 = vmatmul.mubr.msk.bf16.vlgmr.msra.gmra.mrb[24].mxu1 %vm165_vm1, %v1395_v15  ;;  %1968 = vmatmul.mubr.msk.bf16.vlgmr.msra.gmra.mrb[28].mxu0 %vm165_vm1, %v1395_v15 }
0x138d   :  { %1972 = vmatpush3.bf16.msra.mxu1 %v2301_v22  ;;  %1975 = vmatprep.mubr.msk.bf16.mxu1 %vm2183_vm0, %v2182_v0 }
0x138e   :  { %1973 = vmatprep.subr.bf16.mxu1 %v2182_v0 }
0x1391   :  { %1974 = vmatpush3.bf16.msra.mxu1 %v2304_v23 }
0x145f   :  { %v1433_v19 = vpop.f32.mrb[24].mxu1  ;;  %v1551_v20 = vpop.f32.mrb[28].mxu0 }
0x1460   :  { %v1557_v21 = vadd.f32 %v1551_v20, %v1516_v18  ;;  %v1961_v22 = vpop.f32.mrb[25].mxu1  ;;  %v1969_v25 = vpop.f32.mrb[29].mxu0  ;;  %v2474_v57 = vadd.f32 %v2443_v41, %v1433_v19 }
0x1461   :  { %v1436_v26 = vpop.f32.mrb[26].mxu1  ;;  %v1554_v28 = vpop.f32.mrb[30].mxu0 }
0x1462   :  { %2052 = vtanh.f32 %v1557_v21  ;;  %v1962_v0 = vpop.f32.mrb[27].mxu1  ;;  %v1970_v29 = vpop.f32.mrb[31].mxu0  ;;  %v1797_v30 = vmul.f32 -1.442695, %v1557_v21 }
0x1464   :  { %2054 = vpow2.f32 %v1797_v30 }
0x146c   :  { %v2053_v23 = vpop.eup %2052 }
0x146d   :  { %1567 = vrot.lane.b32.xlu0 %v2053_v23, %s2176_s12 }
0x146e   :  { %v2055_v31 = vpop.eup %2054 }
0x146f   :  { %v1561_v33 = vadd.f32 1.0, %v2055_v31 }
0x1471   :  { %2056 = vrcp.f32 %v1561_v33 }
0x147b   :  { %v2057_v34 = vpop.eup %2056 }
0x147c   :  { %v1565_v37 = vmul.f32 %v2057_v34, %v1385_v10 }
0x14df   :  { %v1568_v35 = vpop.permute.xlu0 %1567 }
0x14e0   :  { %v1570_v36 = vmul.f32 %v2057_v34, %v1568_v35 }
0x14e2   :  { %1572 = vrot.lane.b32.xlu1 %v1570_v36, %s2185_s18 }
0x1554   :  { %v1573_v38 = vpop.permute.xlu1 %1572 }
0x1555   :  { %v1575_v39 = vadd.f32 %v1573_v38, %v1565_v37 }
0x1557   :  { %2058 = vtanh.f32 %v1575_v39 }
0x1561   :  { %v2059_v40 = vpop.eup %2058 }
0x1562   :  { %1578 = vrot.lane.b32.xlu0 %v2059_v40, %s2176_s12 }
0x1581   :  { %299 = vmax.xlane.f32.xlu0 %v294_v42 }
0x1585   :  { %489 = vmax.xlane.f32.xlu0 %v2449_v43 }
0x15d4   :  { %v1579_v44 = vpop.permute.xlu0 %1578 }
0x15d5   :  { %v1581_v45 = vmul.f32 %v2057_v34, %v1579_v44 }
0x15d7   :  { %v1582_v46 = vpack.c.bf16 %v1581_v45, %v1581_v45 }
0x15d9   :  { %1584 = vrot.lane.b32.xlu1 %v1582_v46, %s2185_s18 }
0x160e   :  { %v300_v47 = vpop.xlane.xlu0 %299 }
0x160f   :  { %v301_v48 = vsub.f32 %v294_v42, %v300_v47 }
0x1611   :  { %v302_v49 = vmul.f32 1.442695, %v301_v48 }
0x1612   :  { %v490_v1 = vpop.xlane.xlu0 %489 }
0x1613   :  { %2060 = vpow2.f32 %v302_v49  ;;  %v491_v50 = vsub.f32 %v2449_v43, %v490_v1 }
0x1615   :  { %v492_v32 = vmul.f32 1.442695, %v491_v50 }
0x1617   :  { %2062 = vpow2.f32 %v492_v32 }
0x161d   :  { %v2061_v51 = vpop.eup %2060 }
0x161e   :  { %304 = vadd.xlane.f32.xlu1 %v2061_v51 }
0x1621   :  { %v2063_v53 = vpop.eup %2062 }
0x1622   :  { %494 = vadd.xlane.f32.xlu0 %v2063_v53  ;;  %679 = vmax.xlane.f32.xlu1 %v2456_v59 }
0x1626   :  { %869 = vmax.xlane.f32.xlu0 %v2461_v54  ;;  %1059 = vmax.xlane.f32.xlu1 %v2465_v56 }
0x162a   :  { %1249 = vmax.xlane.f32.xlu0 %v2471_v27  ;;  %1439 = vmax.xlane.f32.xlu1 %v2474_v57 }
0x164b   :  { %v1585_v55 = vpop.permute.xlu1 %1584 }
0x164c   :  { %1976 = vmatmul.mubr.msk.bf16.vlgmr.msra.gmra.mrb[28].mxu1 %vm165_vm1, %v1585_v55 }
0x16ab   :  { %v305_v24 = vpop.xlane.xlu1 %304 }
0x16ac   :  { %2064 = vlog2.f32 %v305_v24 }
0x16af   :  { %v495_v2 = vpop.xlane.xlu0 %494  ;;  %v2479_v58 = vpop.xlane.xlu1 %679 }
0x16b0   :  { %2066 = vlog2.f32 %v495_v2  ;;  %v681_v52 = vsub.f32 %v2456_v59, %v2479_v58 }
0x16b2   :  { %v682_v63 = vmul.f32 1.442695, %v681_v52 }
0x16b3   :  { %v2483_v3 = vpop.xlane.xlu1 %1059  ;;  %v2554_v32 = vpop.xlane.xlu0 %869 }
0x16b4   :  { %2068 = vpow2.f32 %v682_v63  ;;  %v1061_v4 = vsub.f32 %v2465_v56, %v2483_v3  ;;  %v871_v51 = vsub.f32 %v2461_v54, %v2554_v32 }
0x16b6   :  { %v2065_v7 = vpop.eup %2064  ;;  %v1062_v8 = vmul.f32 1.442695, %v1061_v4  ;;  %v872_v55 = vmul.f32 1.442695, %v871_v51 }
0x16b7   :  { %v307_v9 = vmul.f32 0.6931472, %v2065_v7  ;;  %v2487_v10 = vpop.xlane.xlu1 %1439  ;;  %v2558_v53 = vpop.xlane.xlu0 %1249 }
0x16b8   :  { %v1441_v11 = vsub.f32 %v2474_v57, %v2487_v10  ;;  %2070 = vpow2.f32 %v1062_v8  ;;  %v1251_v24 = vsub.f32 %v2471_v27, %v2558_v53 }
0x16b9   :  { %v308_v13 = vadd.f32 %v307_v9, %v300_v47 }
0x16ba   :  { %v2067_v14 = vpop.eup %2066  ;;  %v1442_v15 = vmul.f32 1.442695, %v1441_v11  ;;  %v1252_v2 = vmul.f32 1.442695, %v1251_v24 }
0x16bb   :  { %v309_v16 = vsub.f32 %v294_v42, %v308_v13  ;;  %v497_v17 = vmul.f32 0.6931472, %v2067_v14 }
0x16bc   :  { %2072 = vpow2.f32 %v1442_v15 }
0x16bd   :  { %v311_v18 = vcombine.high %v309_v16, %v309_v16  ;;  %v318_v19 = vrot.slane %v309_v16, %v2491_v12  ;;  %v498_v20 = vadd.f32 %v497_v17, %v490_v1  ;;  %2074 = vpow2.f32 %v872_v55 }
0x16be   :  { %v2069_v21 = vpop.eup %2068  ;;  %2076 = vpow2.f32 %v1252_v2 }
0x16bf   :  { %v325_v22 = vrot.slane %v311_v18, %v2491_v12  ;;  %v326_v25 = vcombine.high %v318_v19, %v318_v19  ;;  %v334_v26 = vrot.slane %v318_v19, %v2491_v12  ;;  %1750 = vst.sshfl [vmem:[%s2767_s5] sm:$0x1 pattern:$0x73625140] %v318_v19  ;;  %v499_v28 = vsub.f32 %v2449_v43, %v498_v20 }
0x16c0   :  { %684 = vadd.xlane.f32.xlu1 %v2069_v21 }
0x16c1   :  { %v327_v0 = vcombine.high %v325_v22, %v325_v22  ;;  %v341_v29 = vrot.slane %v325_v22, %v2491_v12  ;;  %v348_v23 = vrot.slane %v326_v25, %v2491_v12  ;;  %v356_v30 = vcombine.high %v334_v26, %v334_v26  ;;  %1751 = vst.sshfl [vmem:[%s2767_s5 + $0x8] sm:$0x1 pattern:$0x73625140] %v326_v25 }
0x16c2   :  { %1752 = vst.sshfl [vmem:[%s2767_s5 + $0x20] sm:$0x1 pattern:$0x73625140] %v325_v22  ;;  %v501_v31 = vcombine.high %v499_v28, %v499_v28  ;;  %v508_v33 = vrot.slane %v499_v28, %v2491_v12  ;;  %v2071_v34 = vpop.eup %2070 }
0x16c3   :  { %v355_v35 = vrot.slane %v327_v0, %v2491_v12  ;;  %v357_v36 = vcombine.high %v341_v29, %v341_v29  ;;  %v358_v37 = vcombine.high %v348_v23, %v348_v23  ;;  %370 = vst [vmem:[%s2767_s5 + $0x10] sm:$0x1] %v356_v30  ;;  %1753 = vst.sshfl [vmem:[%s2767_s5 + $0x28] sm:$0x1 pattern:$0x73625140] %v327_v0 }
0x16c4   :  { %v515_v38 = vrot.slane %v501_v31, %v2491_v12  ;;  %v516_v39 = vcombine.high %v508_v33, %v508_v33  ;;  %v524_v40 = vrot.slane %v508_v33, %v2491_v12  ;;  %1757 = vst.sshfl [vmem:[%s2767_s5 + $0x1] sm:$0x1 pattern:$0x73625140] %v508_v33  ;;  %1064 = vadd.xlane.f32.xlu1 %v2071_v34 }
0x16c5   :  { %v359_v42 = vcombine.high %v355_v35, %v355_v35  ;;  %371 = vst [vmem:[%s2767_s5 + $0x18] sm:$0x1] %v358_v37  ;;  %374 = vst [vmem:[%s2767_s5 + $0x30] sm:$0x1] %v357_v36 }
0x16c6   :  { %v517_v43 = vcombine.high %v515_v38, %v515_v38  ;;  %v531_v44 = vrot.slane %v515_v38, %v2491_v12  ;;  %v538_v45 = vrot.slane %v516_v39, %v2491_v12  ;;  %v546_v46 = vcombine.high %v524_v40, %v524_v40  ;;  %1758 = vst.sshfl [vmem:[%s2767_s5 + $0x9] sm:$0x1 pattern:$0x73625140] %v516_v39  ;;  %v2073_v47 = vpop.eup %2072 }
0x16c7   :  { %1759 = vst.sshfl [vmem:[%s2767_s5 + $0x21] sm:$0x1 pattern:$0x73625140] %v515_v38  ;;  %375 = vst [vmem:[%s2767_s5 + $0x38] sm:$0x1] %v359_v42  ;;  %v2075_v4 = vpop.eup %2074 }
0x16c8   :  { %v545_v48 = vrot.slane %v517_v43, %v2491_v12  ;;  %v547_v49 = vcombine.high %v531_v44, %v531_v44  ;;  %v548_v1 = vcombine.high %v538_v45, %v538_v45  ;;  %560 = vst [vmem:[%s2767_s5 + $0x11] sm:$0x1] %v546_v46  ;;  %1760 = vst.sshfl [vmem:[%s2767_s5 + $0x29] sm:$0x1 pattern:$0x73625140] %v517_v43  ;;  %1444 = vadd.xlane.f32.xlu1 %v2073_v47  ;;  %v2077_v5 = vpop.eup %2076 }
0x16ca   :  { %v549_v50 = vcombine.high %v545_v48, %v545_v48  ;;  %561 = vst [vmem:[%s2767_s5 + $0x19] sm:$0x1] %v548_v1  ;;  %564 = vst [vmem:[%s2767_s5 + $0x31] sm:$0x1] %v547_v49 }
0x16cc   :  { %565 = vst [vmem:[%s2767_s5 + $0x39] sm:$0x1] %v549_v50 }
0x171f   :  { %v1623_v52 = vpop.f32.mrb[28].mxu1 }
0x1720   :  { %v2563_v60 = vadd.f32 %v2443_v41, %v1623_v52  ;;  %v1977_v61 = vpop.f32.mrb[29].mxu1 }
0x1721   :  { %v1626_v62 = vpop.f32.mrb[30].mxu1 }
0x1722   :  { %1629 = vmax.xlane.f32.xlu0 %v2563_v60  ;;  %v1978_v63 = vpop.f32.mrb[31].mxu1 }
0x1726   :  { %874 = vadd.xlane.f32.xlu0 %v2075_v4 }
0x172a   :  { %1254 = vadd.xlane.f32.xlu0 %v2077_v5 }
0x174d   :  { %v685_v6 = vpop.xlane.xlu1 %684 }
0x174e   :  { %2078 = vlog2.f32 %v685_v6 }
0x1751   :  { %v1065_v7 = vpop.xlane.xlu1 %1064 }
0x1752   :  { %2080 = vlog2.f32 %v1065_v7 }
0x1755   :  { %v1445_v8 = vpop.xlane.xlu1 %1444 }
0x1756   :  { %2082 = vlog2.f32 %v1445_v8 }
0x1758   :  { %v2079_v9 = vpop.eup %2078 }
0x1759   :  { %v687_v11 = vmul.f32 0.6931472, %v2079_v9 }
0x175b   :  { %v688_v41 = vadd.f32 %v687_v11, %v2479_v58 }
0x175c   :  { %v2081_v13 = vpop.eup %2080 }
0x175d   :  { %v689_v14 = vsub.f32 %v2456_v59, %v688_v41  ;;  %v1067_v15 = vmul.f32 0.6931472, %v2081_v13 }
0x175f   :  { %v691_v16 = vcombine.high %v689_v14, %v689_v14  ;;  %v698_v17 = vrot.slane %v689_v14, %v2491_v12  ;;  %v1068_v18 = vadd.f32 %v1067_v15, %v2483_v3 }
0x1760   :  { %v2083_v19 = vpop.eup %2082 }
0x1761   :  { %v705_v20 = vrot.slane %v691_v16, %v2491_v12  ;;  %v706_v21 = vcombine.high %v698_v17, %v698_v17  ;;  %v714_v22 = vrot.slane %v698_v17, %v2491_v12  ;;  %1764 = vst.sshfl [vmem:[%s2767_s5 + $0x2] sm:$0x1 pattern:$0x73625140] %v698_v17  ;;  %v1069_v58 = vsub.f32 %v2465_v56, %v1068_v18 }
0x1762   :  { %v1447_v25 = vmul.f32 0.6931472, %v2083_v19 }
0x1763   :  { %v707_v59 = vcombine.high %v705_v20, %v705_v20  ;;  %v721_v26 = vrot.slane %v705_v20, %v2491_v12  ;;  %v728_v28 = vrot.slane %v706_v21, %v2491_v12  ;;  %v736_v0 = vcombine.high %v714_v22, %v714_v22  ;;  %1765 = vst.sshfl [vmem:[%s2767_s5 + $0xa] sm:$0x1 pattern:$0x73625140] %v706_v21 }
0x1764   :  { %1766 = vst.sshfl [vmem:[%s2767_s5 + $0x22] sm:$0x1 pattern:$0x73625140] %v705_v20  ;;  %v1071_v3 = vcombine.high %v1069_v58, %v1069_v58  ;;  %v1078_v29 = vrot.slane %v1069_v58, %v2491_v12  ;;  %v1448_v56 = vadd.f32 %v1447_v25, %v2487_v10 }
0x1765   :  { %v735_v23 = vrot.slane %v707_v59, %v2491_v12  ;;  %v737_v30 = vcombine.high %v721_v26, %v721_v26  ;;  %v738_v31 = vcombine.high %v728_v28, %v728_v28  ;;  %750 = vst [vmem:[%s2767_s5 + $0x12] sm:$0x1] %v736_v0  ;;  %1767 = vst.sshfl [vmem:[%s2767_s5 + $0x2a] sm:$0x1 pattern:$0x73625140] %v707_v59 }
0x1766   :  { %v1085_v33 = vrot.slane %v1071_v3, %v2491_v12  ;;  %v1086_v34 = vcombine.high %v1078_v29, %v1078_v29  ;;  %v1094_v35 = vrot.slane %v1078_v29, %v2491_v12  ;;  %1778 = vst.sshfl [vmem:[%s2767_s5 + $0x4] sm:$0x1 pattern:$0x73625140] %v1078_v29  ;;  %v1449_v10 = vsub.f32 %v2474_v57, %v1448_v56 }
0x1767   :  { %v739_v36 = vcombine.high %v735_v23, %v735_v23  ;;  %751 = vst [vmem:[%s2767_s5 + $0x1a] sm:$0x1] %v738_v31  ;;  %754 = vst [vmem:[%s2767_s5 + $0x32] sm:$0x1] %v737_v30 }
0x1768   :  { %v1087_v37 = vcombine.high %v1085_v33, %v1085_v33  ;;  %v1101_v38 = vrot.slane %v1085_v33, %v2491_v12  ;;  %v1108_v39 = vrot.slane %v1086_v34, %v2491_v12  ;;  %v1116_v40 = vcombine.high %v1094_v35, %v1094_v35  ;;  %1779 = vst.sshfl [vmem:[%s2767_s5 + $0xc] sm:$0x1 pattern:$0x73625140] %v1086_v34 }
0x1769   :  { %1780 = vst.sshfl [vmem:[%s2767_s5 + $0x24] sm:$0x1 pattern:$0x73625140] %v1085_v33  ;;  %755 = vst [vmem:[%s2767_s5 + $0x3a] sm:$0x1] %v739_v36  ;;  %v1451_v57 = vcombine.high %v1449_v10, %v1449_v10  ;;  %v1458_v42 = vrot.slane %v1449_v10, %v2491_v12 }
0x176a   :  { %v1115_v43 = vrot.slane %v1087_v37, %v2491_v12  ;;  %v1117_v44 = vcombine.high %v1101_v38, %v1101_v38  ;;  %v1118_v45 = vcombine.high %v1108_v39, %v1108_v39  ;;  %1130 = vst [vmem:[%s2767_s5 + $0x14] sm:$0x1] %v1116_v40  ;;  %1781 = vst.sshfl [vmem:[%s2767_s5 + $0x2c] sm:$0x1 pattern:$0x73625140] %v1087_v37 }
0x176b   :  { %v1465_v46 = vrot.slane %v1451_v57, %v2491_v12  ;;  %v1466_v47 = vcombine.high %v1458_v42, %v1458_v42  ;;  %v1474_v48 = vrot.slane %v1458_v42, %v2491_v12  ;;  %1792 = vst.sshfl [vmem:[%s2767_s5 + $0x6] sm:$0x1 pattern:$0x73625140] %v1458_v42 }
0x176c   :  { %v1119_v49 = vcombine.high %v1115_v43, %v1115_v43  ;;  %1131 = vst [vmem:[%s2767_s5 + $0x1c] sm:$0x1] %v1118_v45  ;;  %1134 = vst [vmem:[%s2767_s5 + $0x34] sm:$0x1] %v1117_v44 }
0x176d   :  { %v1467_v1 = vcombine.high %v1465_v46, %v1465_v46  ;;  %v1481_v50 = vrot.slane %v1465_v46, %v2491_v12  ;;  %v1488_v51 = vrot.slane %v1466_v47, %v2491_v12  ;;  %v1496_v55 = vcombine.high %v1474_v48, %v1474_v48  ;;  %1793 = vst.sshfl [vmem:[%s2767_s5 + $0xe] sm:$0x1 pattern:$0x73625140] %v1466_v47 }
0x176e   :  { %1794 = vst.sshfl [vmem:[%s2767_s5 + $0x26] sm:$0x1 pattern:$0x73625140] %v1465_v46  ;;  %1135 = vst [vmem:[%s2767_s5 + $0x3c] sm:$0x1] %v1119_v49 }
0x176f   :  { %v1495_v24 = vrot.slane %v1467_v1, %v2491_v12  ;;  %v1497_v2 = vcombine.high %v1481_v50, %v1481_v50  ;;  %v1498_v52 = vcombine.high %v1488_v51, %v1488_v51  ;;  %1510 = vst [vmem:[%s2767_s5 + $0x16] sm:$0x1] %v1496_v55  ;;  %1795 = vst.sshfl [vmem:[%s2767_s5 + $0x2e] sm:$0x1 pattern:$0x73625140] %v1467_v1 }
0x1771   :  { %v1499_v61 = vcombine.high %v1495_v24, %v1495_v24  ;;  %1511 = vst [vmem:[%s2767_s5 + $0x1e] sm:$0x1] %v1498_v52  ;;  %1514 = vst [vmem:[%s2767_s5 + $0x36] sm:$0x1] %v1497_v2 }
0x1773   :  { %1515 = vst [vmem:[%s2767_s5 + $0x3e] sm:$0x1] %v1499_v61 }
0x17af   :  { %v2662_v62 = vpop.xlane.xlu0 %1629 }
0x17b0   :  { %v1631_v63 = vsub.f32 %v2563_v60, %v2662_v62 }
0x17b2   :  { %v1632_v4 = vmul.f32 1.442695, %v1631_v63 }
0x17b3   :  { %v875_v5 = vpop.xlane.xlu0 %874 }
0x17b4   :  { %2084 = vpow2.f32 %v1632_v4 }
0x17b5   :  { %2086 = vlog2.f32 %v875_v5 }
0x17b7   :  { %v1255_v6 = vpop.xlane.xlu0 %1254 }
0x17b8   :  { %2088 = vlog2.f32 %v1255_v6 }
0x17be   :  { %v2085_v7 = vpop.eup %2084 }
0x17bf   :  { %v2087_v8 = vpop.eup %2086  ;;  %1634 = vadd.xlane.f32.xlu0 %v2085_v7 }
0x17c0   :  { %v877_v9 = vmul.f32 0.6931472, %v2087_v8 }
0x17c2   :  { %v2089_v11 = vpop.eup %2088  ;;  %v878_v41 = vadd.f32 %v877_v9, %v2554_v32 }
0x17c3   :  { %v1257_v13 = vmul.f32 0.6931472, %v2089_v11 }
0x17c4   :  { %v879_v14 = vsub.f32 %v2461_v54, %v878_v41 }
0x17c5   :  { %v1258_v15 = vadd.f32 %v1257_v13, %v2558_v53 }
0x17c6   :  { %v881_v16 = vcombine.high %v879_v14, %v879_v14  ;;  %v888_v17 = vrot.slane %v879_v14, %v2491_v12 }
0x17c7   :  { %v1259_v18 = vsub.f32 %v2471_v27, %v1258_v15 }
0x17c8   :  { %v895_v19 = vrot.slane %v881_v16, %v2491_v12  ;;  %v896_v20 = vcombine.high %v888_v17, %v888_v17  ;;  %v904_v21 = vrot.slane %v888_v17, %v2491_v12  ;;  %1771 = vst.sshfl [vmem:[%s2767_s5 + $0x3] sm:$0x1 pattern:$0x73625140] %v888_v17 }
0x17c9   :  { %v1261_v32 = vcombine.high %v1259_v18, %v1259_v18  ;;  %v1268_v22 = vrot.slane %v1259_v18, %v2491_v12 }
0x17ca   :  { %v897_v54 = vcombine.high %v895_v19, %v895_v19  ;;  %v911_v53 = vrot.slane %v895_v19, %v2491_v12  ;;  %v918_v58 = vrot.slane %v896_v20, %v2491_v12  ;;  %v926_v25 = vcombine.high %v904_v21, %v904_v21  ;;  %1772 = vst.sshfl [vmem:[%s2767_s5 + $0xb] sm:$0x1 pattern:$0x73625140] %v896_v20 }
0x17cb   :  { %1773 = vst.sshfl [vmem:[%s2767_s5 + $0x23] sm:$0x1 pattern:$0x73625140] %v895_v19  ;;  %v1275_v27 = vrot.slane %v1261_v32, %v2491_v12  ;;  %v1276_v59 = vcombine.high %v1268_v22, %v1268_v22  ;;  %v1284_v26 = vrot.slane %v1268_v22, %v2491_v12 }
0x17cc   :  { %1785 = vst.sshfl [vmem:[%s2767_s5 + $0x5] sm:$0x1 pattern:$0x73625140] %v1268_v22  ;;  %v925_v28 = vrot.slane %v897_v54, %v2491_v12  ;;  %v927_v0 = vcombine.high %v911_v53, %v911_v53  ;;  %v928_v3 = vcombine.high %v918_v58, %v918_v58  ;;  %940 = vst [vmem:[%s2767_s5 + $0x13] sm:$0x1] %v926_v25 }
0x17cd   :  { %1774 = vst.sshfl [vmem:[%s2767_s5 + $0x2b] sm:$0x1 pattern:$0x73625140] %v897_v54  ;;  %v1277_v29 = vcombine.high %v1275_v27, %v1275_v27  ;;  %v1291_v56 = vrot.slane %v1275_v27, %v2491_v12  ;;  %v1298_v23 = vrot.slane %v1276_v59, %v2491_v12  ;;  %v1306_v30 = vcombine.high %v1284_v26, %v1284_v26 }
0x17ce   :  { %1786 = vst.sshfl [vmem:[%s2767_s5 + $0xd] sm:$0x1 pattern:$0x73625140] %v1276_v59  ;;  %v929_v31 = vcombine.high %v925_v28, %v925_v28  ;;  %941 = vst [vmem:[%s2767_s5 + $0x1b] sm:$0x1] %v928_v3 }
0x17cf   :  { %1787 = vst.sshfl [vmem:[%s2767_s5 + $0x25] sm:$0x1 pattern:$0x73625140] %v1275_v27  ;;  %944 = vst [vmem:[%s2767_s5 + $0x33] sm:$0x1] %v927_v0  ;;  %v1305_v33 = vrot.slane %v1277_v29, %v2491_v12  ;;  %v1307_v34 = vcombine.high %v1291_v56, %v1291_v56  ;;  %v1308_v35 = vcombine.high %v1298_v23, %v1298_v23 }
0x17d0   :  { %1320 = vst [vmem:[%s2767_s5 + $0x15] sm:$0x1] %v1306_v30  ;;  %1788 = vst.sshfl [vmem:[%s2767_s5 + $0x2d] sm:$0x1 pattern:$0x73625140] %v1277_v29 }
0x17d1   :  { %945 = vst [vmem:[%s2767_s5 + $0x3b] sm:$0x1] %v929_v31  ;;  %v1309_v10 = vcombine.high %v1305_v33, %v1305_v33  ;;  %1321 = vst [vmem:[%s2767_s5 + $0x1d] sm:$0x1] %v1308_v35 }
0x17d2   :  { %1324 = vst [vmem:[%s2767_s5 + $0x35] sm:$0x1] %v1307_v34 }
0x17d3   :  { %1325 = vst [vmem:[%s2767_s5 + $0x3d] sm:$0x1] %v1309_v10 }
0x184c   :  { %v1635_v36 = vpop.xlane.xlu0 %1634 }
0x184d   :  { %2090 = vlog2.f32 %v1635_v36 }
0x1857   :  { %v2091_v37 = vpop.eup %2090 }
0x1858   :  { %v1637_v38 = vmul.f32 0.6931472, %v2091_v37 }
0x185a   :  { %v1638_v39 = vadd.f32 %v1637_v38, %v2662_v62 }
0x185c   :  { %v1639_v40 = vsub.f32 %v2563_v60, %v1638_v39 }
0x185e   :  { %v1641_v57 = vcombine.high %v1639_v40, %v1639_v40  ;;  %v1648_v42 = vrot.slane %v1639_v40, %v2491_v12 }
0x1860   :  { %v1655_v43 = vrot.slane %v1641_v57, %v2491_v12  ;;  %v1656_v44 = vcombine.high %v1648_v42, %v1648_v42  ;;  %v1664_v45 = vrot.slane %v1648_v42, %v2491_v12  ;;  %1799 = vst.sshfl [vmem:[%s2767_s5 + $0x7] sm:$0x1 pattern:$0x73625140] %v1648_v42 }
0x1862   :  { %v1657_v46 = vcombine.high %v1655_v43, %v1655_v43  ;;  %v1671_v47 = vrot.slane %v1655_v43, %v2491_v12  ;;  %v1678_v48 = vrot.slane %v1656_v44, %v2491_v12  ;;  %v1686_v49 = vcombine.high %v1664_v45, %v1664_v45  ;;  %1800 = vst.sshfl [vmem:[%s2767_s5 + $0xf] sm:$0x1 pattern:$0x73625140] %v1656_v44 }
0x1863   :  { %1801 = vst.sshfl [vmem:[%s2767_s5 + $0x27] sm:$0x1 pattern:$0x73625140] %v1655_v43 }
0x1864   :  { %v1685_v60 = vrot.slane %v1657_v46, %v2491_v12  ;;  %v1687_v1 = vcombine.high %v1671_v47, %v1671_v47  ;;  %v1688_v50 = vcombine.high %v1678_v48, %v1678_v48  ;;  %1700 = vst [vmem:[%s2767_s5 + $0x17] sm:$0x1] %v1686_v49  ;;  %1802 = vst.sshfl [vmem:[%s2767_s5 + $0x2f] sm:$0x1 pattern:$0x73625140] %v1657_v46 }
0x1866   :  { %v1689_v51 = vcombine.high %v1685_v60, %v1685_v60  ;;  %1701 = vst [vmem:[%s2767_s5 + $0x1f] sm:$0x1] %v1688_v50  ;;  %1704 = vst [vmem:[%s2767_s5 + $0x37] sm:$0x1] %v1687_v1 }
0x1868   :  { %1705 = vst [vmem:[%s2767_s5 + $0x3f] sm:$0x1] %v1689_v51 }
0x1869   :  { %1710 = vsyncpa [#allocation6], 1 }
0x186a   :  { %1711 = vsyncpa [#allocation8], 1 }

</bundles_post_ra>
